<compile_context>
chip_gen: v5e
topology: v5e:2x2
jax: 0.10.0
libtpu: 0.0.40
codegen_flags: <defaults>
</compile_context>

<pallas_src>
import functools

import numpy as np
import jax
import jax.numpy as jnp
from jax.experimental import pallas as pl
from jax.experimental.pallas import tpu as pltpu


def _round_up(x, m):
    return ((x + m - 1) // m) * m


def _dense_block_kernel(x_ref, m_ref, ew_ref, eb_ref, *rest,
                        growth, n_layers, H, W, off, eps):
    """Fused DenseBlock forward for one sample (grid axis = batch).

    Layout: channels on sublanes, flattened lane-padded spatial (PL) on lanes.
    rest = (dl_w_0..dl_w_{L-1}, exit_w, exit_b, o_ref, feat_ref, patch_ref)
    """
    G = growth
    L = n_layers
    Wp = W + 2
    PL = m_ref.shape[1]                 # lane-padded spatial width (multiple of 128)
    OFF = off                           # 128-aligned shift margin (>= 2*Wp)
    HW = H * W

    dense_w = rest[:L]
    xw_ref, xb_ref, o_ref, feat_ref, patch_ref = rest[L:]

    C_tot, BUFW = feat_ref.shape

    # Zero the shift margins once; all out-of-range tap/halo reads (and the
    # unselected branches of the jnp.where halo selects) land here and must stay
    # finite.  Both margins are 128-lane aligned, whole-vreg stores.
    feat_ref[:, 0:OFF] = jnp.zeros((C_tot, OFF), jnp.float32)
    feat_ref[:, OFF + PL:BUFW] = jnp.zeros((C_tot, BUFW - OFF - PL), jnp.float32)

    # Masks, hoisted and broadcast ONCE (not per unrolled layer iteration).
    m_int = jnp.broadcast_to(m_ref[0:1, :], (G, PL))          # 1.0 at interior pixels
    m_l = jnp.broadcast_to(m_ref[1:2, :] != 0.0, (G, PL))     # c == 0
    m_r = jnp.broadcast_to(m_ref[2:3, :] != 0.0, (G, PL))     # c == W+1
    m_t = jnp.broadcast_to(m_ref[3:4, :] != 0.0, (G, PL))     # r == 0
    m_b = jnp.broadcast_to(m_ref[4:5, :] != 0.0, (G, PL))     # r == H+1

    # ---- Entry 1x1 conv (input arrives reflection-padded; a 1x1 conv commutes
    #      with reflection padding, so the halo ring is already correct). ----
    ent = jnp.dot(ew_ref[...], x_ref[0], preferred_element_type=jnp.float32)
    feat_ref[0:G, OFF:OFF + PL] = ent + eb_ref[...]           # lane-dense store

    inv_hw = 1.0 / float(HW)
    taps = [(dy, dx) for dy in range(3) for dx in range(3)]

    for i in range(L):
        cin = G * (i + 1)               # == n_ch + growth_rate*i  (needs n_ch == growth_rate)
        kdim = 9 * cin
        base = 9 * G * i                # patch rows of this layer's NEW input channels
        c_new = G * i                   # channels produced by the previous stage

        # Incremental im2col: only the 9 taps of the G newly written channels are
        # appended (older layers' rows and their rebuilt halos never change) —
        # 9 lane-dense (G, PL) whole-vreg copies per layer.
        for t, (dy, dx) in enumerate(taps):
            s = (dy - 1) * Wp + (dx - 1)
            patch_ref[base + t * G:base + (t + 1) * G, :] = (
                feat_ref[c_new:c_new + G, OFF + s:OFF + s + PL])

        # Whole 3x3 conv as ONE (G, 9*cin) @ (9*cin, PL) MXU matmul.
        conv = jnp.dot(dense_w[i][...], patch_ref[0:kdim, :],
                       preferred_element_type=jnp.float32)     # (G, PL), lane-dense
        # Conv bias omitted: InstanceNorm's mean subtraction cancels it exactly.

        # InstanceNorm2d (affine=False, biased var, eps) over interior pixels,
        # single reduction pass: var = E[x^2] - mean^2; f32 throughout.
        xm = conv * m_int
        mean = jnp.sum(xm, axis=1, keepdims=True) * inv_hw
        ex2 = jnp.sum(xm * conv, axis=1, keepdims=True) * inv_hw
        var = ex2 - mean * mean
        act = jnp.maximum((conv - mean) * jax.lax.rsqrt(var + eps), 0.0)   # ReLU

        c0 = G * (i + 1)
        feat_ref[c0:c0 + G, OFF:OFF + PL] = act                # lane-dense store

        if i < L - 1:
            # Rebuild this layer's 1-pixel reflection halo in VMEM: horizontal
            # then vertical pass (corners come out right), 2 vsel per pass.
            cur = feat_ref[c0:c0 + G, OFF:OFF + PL]
            sr = feat_ref[c0:c0 + G, OFF + 2:OFF + 2 + PL]             # 2 lanes right
            sl = feat_ref[c0:c0 + G, OFF - 2:OFF - 2 + PL]             # 2 lanes left
            feat_ref[c0:c0 + G, OFF:OFF + PL] = jnp.where(
                m_l, sr, jnp.where(m_r, sl, cur))
            cur = feat_ref[c0:c0 + G, OFF:OFF + PL]
            sd = feat_ref[c0:c0 + G, OFF + 2 * Wp:OFF + 2 * Wp + PL]   # 2 padded rows down
            su = feat_ref[c0:c0 + G, OFF - 2 * Wp:OFF - 2 * Wp + PL]   # 2 padded rows up
            feat_ref[c0:c0 + G, OFF:OFF + PL] = jnp.where(
                m_t, sd, jnp.where(m_b, su, cur))

    # ---- Exit 1x1 conv: ONE lane-dense store of the full padded map.  The halo
    #      lanes of the last layer are never rebuilt, so the wrapper MUST strip
    #      the 1-pixel ring (it does). ----
    c0 = G * L
    ex = jnp.dot(xw_ref[...], feat_ref[c0:c0 + G, OFF:OFF + PL],
                 preferred_element_type=jnp.float32) + xb_ref[...]
    o_ref[0, :, :] = ex


def dense_block_forward(x_nchw, params, n_dense_layers, block_weight=False):
    """x_nchw: (N, n_ch, H, W) float32 -> (N, n_ch, H, W)."""
    x = x_nchw.astype(jnp.float32)
    N, n_ch, H, W = x.shape
    G = params["entry_w"].shape[0]
    assert n_ch == G, "the torch forward is only consistent when n_ch == growth_rate"
    L = n_dense_layers
    Hp, Wp = H + 2, W + 2
    P = Hp * Wp
    PL = _round_up(P, 128)                 # lane-padded spatial width (whole vregs)
    OFF = _round_up(2 * Wp, 128)           # 128-aligned left shift margin
    BUFW = OFF + PL + _round_up(2 * Wp, 128)
    C_tot = G * (L + 1)

    # One tiny reflection pad of the raw input (all per-layer padding happens in
    # VMEM inside the kernel); zero-pad the extra lanes up to PL.
    xpad = jnp.pad(x, ((0, 0), (0, 0), (1, 1), (1, 1)), mode="reflect").reshape(N, n_ch, P)
    xpad = jnp.pad(xpad, ((0, 0), (0, 0), (0, PL - P)))

    # Static masks over the lane-padded flattened grid (built host-side, tiny).
    rr = np.repeat(np.arange(Hp), Wp)
    cc = np.tile(np.arange(Wp), Hp)
    masks = np.zeros((5, PL), np.float32)
    masks[0, :P] = (rr >= 1) & (rr <= H) & (cc >= 1) & (cc <= W)   # interior
    masks[1, :P] = (cc == 0)                                       # left halo col
    masks[2, :P] = (cc == W + 1)                                   # right halo col
    masks[3, :P] = (rr == 0)                                       # top halo row
    masks[4, :P] = (rr == H + 1)                                   # bottom halo row
    masks = jnp.asarray(masks)

    dense_ws = [params[f"dl{i}_w"] for i in range(L)]

    kernel = functools.partial(
        _dense_block_kernel, growth=G, n_layers=L, H=H, W=W, off=OFF, eps=1e-5)

    in_specs = [
        pl.BlockSpec((1, n_ch, PL), lambda n: (n, 0, 0)),   # padded input (per sample)
        pl.BlockSpec((5, PL), lambda n: (0, 0)),            # masks
        pl.BlockSpec((G, n_ch), lambda n: (0, 0)),          # entry weight
        pl.BlockSpec((G, 1), lambda n: (0, 0)),             # entry bias
    ]
    for i in range(L):
        in_specs.append(pl.BlockSpec((G, 9 * G * (i + 1)), lambda n: (0, 0)))
    in_specs += [
        pl.BlockSpec((n_ch, G), lambda n: (0, 0)),          # exit weight
        pl.BlockSpec((n_ch, 1), lambda n: (0, 0)),          # exit bias
    ]

    out = pl.pallas_call(
        kernel,
        out_shape=jax.ShapeDtypeStruct((N, n_ch, PL), jnp.float32),
        grid=(N,),                                          # batch axis -> both v7x TCs at N>=2
        in_specs=in_specs,
        out_specs=pl.BlockSpec((1, n_ch, PL), lambda n: (n, 0, 0)),
        scratch_shapes=[
            pltpu.VMEM((C_tot, BUFW), jnp.float32),         # VMEM-resident padded feature stack
            pltpu.VMEM((9 * G * L, PL), jnp.float32),       # incremental im2col patch buffer
        ],
        compiler_params=pltpu.CompilerParams(
            dimension_semantics=("parallel",),
            vmem_limit_bytes=32 * 1024 * 1024,              # explicit budget, safe on v7x (64 MiB)
        ),
    )(xpad, masks, params["entry_w"], params["entry_b"].reshape(G, 1),
      *dense_ws, params["exit_w"], params["exit_b"].reshape(n_ch, 1))

    # Strip the lane padding and the 1-pixel reflection halo (not valid data for
    # the last layer) with cheap wrapper-side slices.
    out = out[:, :, :P].reshape(N, n_ch, Hp, Wp)[:, :, 1:1 + H, 1:1 + W]
    if block_weight:
        out = params["block_weight"] * out
    return out


# ----------------------------------------------------------------------------
# Parameter construction (deterministic, mirrors the PyTorch module shapes)
# ----------------------------------------------------------------------------
def init_dense_block_params(key, n_ch, growth_rate, n_dense_layers, block_weight=False):
    assert n_ch == growth_rate
    G = growth_rate
    params = {}
    keys = jax.random.split(key, 2 * (n_dense_layers + 2) + 1)
    k = iter(keys)

    # Entry: Conv2d(n_ch, G, kernel_size=1)  [nn.Conv2d(nn.Conv2d(...)) in the
    # original __init__ is a bug; the intended plain 1x1 conv is implemented].
    w = 0.1 * jax.random.normal(next(k), (G, n_ch, 1, 1), jnp.float32)
    params["entry_w"] = w[:, :, 0, 0]                      # (G, n_ch)
    params["entry_b"] = 0.1 * jax.random.normal(next(k), (G,), jnp.float32)

    # Dense layers: Conv2d(n_ch + G*i, G, kernel_size=3).  Kernel-side K ordering
    # is layer-block-major, then tap (3*dy+dx), then channel-within-block, to
    # match the incremental im2col; reorder the weights host-side accordingly.
    for i in range(n_dense_layers):
        cin = n_ch + G * i
        w = 0.1 * jax.random.normal(next(k), (G, cin, 3, 3), jnp.float32)
        params[f"dl{i}_w_raw"] = w                          # used by the pure-JAX reference
        params[f"dl{i}_w"] = (
            w.reshape(G, i + 1, G, 3, 3)
             .transpose(0, 1, 3, 4, 2)
             .reshape(G, 9 * cin))
        # Conv bias exists in the torch module but is cancelled exactly by the
        # following InstanceNorm; used only by the reference, never by the kernel.
        params[f"dl{i}_b"] = 0.1 * jax.random.normal(next(k), (G,), jnp.float32)

    # Exit: Conv2d(G, n_ch, kernel_size=1)
    w = 0.1 * jax.random.normal(next(k), (n_ch, G, 1, 1), jnp.float32)
    params["exit_w"] = w[:, :, 0, 0]                       # (n_ch, G)
    params["exit_b"] = 0.1 * jax.random.normal(next(k), (n_ch,), jnp.float32)

    if block_weight:
        params["block_weight"] = jnp.float32(1.0)
    return params


# ----------------------------------------------------------------------------
# Pure-JAX reference (mirrors the PyTorch module) for a tolerance check.
# ----------------------------------------------------------------------------
def dense_block_reference(x, params, n_dense_layers, block_weight=False):
    G = params["entry_w"].shape[0]
    feats = (jnp.einsum("gc,nchw->nghw", params["entry_w"], x)
             + params["entry_b"][None, :, None, None])
    for i in range(n_dense_layers):
        xp = jnp.pad(feats, ((0, 0), (0, 0), (1, 1), (1, 1)), mode="reflect")
        y = jax.lax.conv_general_dilated(
            xp, params[f"dl{i}_w_raw"], (1, 1), "VALID",
            dimension_numbers=("NCHW", "OIHW", "NCHW"))
        y = y + params[f"dl{i}_b"][None, :, None, None]
        mean = y.mean(axis=(2, 3), keepdims=True)
        var = y.var(axis=(2, 3), keepdims=True)
        y = jnp.maximum((y - mean) * jax.lax.rsqrt(var + 1e-5), 0.0)
        feats = jnp.concatenate([feats, y], axis=1)
    last = feats[:, G * n_dense_layers:, :, :]
    out = (jnp.einsum("og,nghw->nohw", params["exit_w"], last)
           + params["exit_b"][None, :, None, None])
    if block_weight:
        out = params["block_weight"] * out
    return out


if __name__ == "__main__":
    # Small, self-consistent configuration (n_ch == growth_rate is required for
    # the original module's forward pass to have matching channel counts).
    N, n_ch, H, W = 2, 8, 16, 16
    growth_rate = 8
    n_dense_layers = 3
    block_weight = False

    key = jax.random.PRNGKey(0)
    kx, kp = jax.random.split(key)
    x = jax.random.normal(kx, (N, n_ch, H, W), jnp.float32)
    params = init_dense_block_params(
        kp, n_ch, growth_rate, n_dense_layers, block_weight=block_weight)

    fwd = jax.jit(
        functools.partial(
            dense_block_forward,
            n_dense_layers=n_dense_layers,
            block_weight=block_weight,
        )
    )
    out = fwd(x, params)
    jax.block_until_ready(out)
    assert out.shape == (N, n_ch, H, W), out.shape

    ref = dense_block_reference(x, params, n_dense_layers, block_weight=block_weight)
    np.testing.assert_allclose(np.asarray(out), np.asarray(ref), rtol=2e-3, atol=2e-3)

    print("KERNEL_OK")
</pallas_src>

<mosaic_0001>
module attributes {stable_mosaic.version = 11 : i64} {
  func.func @_dense_block_kernel(%arg0: i32, %arg1: memref<1x8x384xf32, #tpu.memory_space<vmem>>, %arg2: memref<5x384xf32, #tpu.memory_space<vmem>>, %arg3: memref<8x8xf32, #tpu.memory_space<vmem>>, %arg4: memref<8x1xf32, #tpu.memory_space<vmem>>, %arg5: memref<8x72xf32, #tpu.memory_space<vmem>>, %arg6: memref<8x144xf32, #tpu.memory_space<vmem>>, %arg7: memref<8x216xf32, #tpu.memory_space<vmem>>, %arg8: memref<8x8xf32, #tpu.memory_space<vmem>>, %arg9: memref<8x1xf32, #tpu.memory_space<vmem>>, %arg10: memref<1x8x384xf32, #tpu.memory_space<vmem>>, %arg11: memref<32x640xf32, #tpu.memory_space<vmem>>, %arg12: memref<216x384xf32, #tpu.memory_space<vmem>>) attributes {dimension_semantics = [#tpu.dimension_semantics<parallel>], iteration_bounds = array<i64: 2>, scalar_prefetch = 0 : i64, scratch_operands = 2 : i64, tpu.core_type = #tpu.core_type<tc>, window_params = [{transform_indices = @transform_0, window_bounds = array<i64: 1, 8, 384>}, {pipeline_mode = #tpu.pipeline_mode<synchronous>, transform_indices = @transform_1, window_bounds = array<i64: 5, 384>}, {pipeline_mode = #tpu.pipeline_mode<synchronous>, transform_indices = @transform_2, window_bounds = array<i64: 8, 8>}, {pipeline_mode = #tpu.pipeline_mode<synchronous>, transform_indices = @transform_3, window_bounds = array<i64: 8, 1>}, {pipeline_mode = #tpu.pipeline_mode<synchronous>, transform_indices = @transform_4, window_bounds = array<i64: 8, 72>}, {pipeline_mode = #tpu.pipeline_mode<synchronous>, transform_indices = @transform_5, window_bounds = array<i64: 8, 144>}, {pipeline_mode = #tpu.pipeline_mode<synchronous>, transform_indices = @transform_6, window_bounds = array<i64: 8, 216>}, {pipeline_mode = #tpu.pipeline_mode<synchronous>, transform_indices = @transform_7, window_bounds = array<i64: 8, 8>}, {pipeline_mode = #tpu.pipeline_mode<synchronous>, transform_indices = @transform_8, window_bounds = array<i64: 8, 1>}, {transform_indices = @transform_9, window_bounds = array<i64: 1, 8, 384>}]} {
    %cst = arith.constant 0.000000e+00 : f32
    %0 = vector.broadcast %cst : f32 to vector<32x128xf32>
    %c0 = arith.constant 0 : index
    %c0_0 = arith.constant 0 : index
    %1 = vector.load %arg11[%c0, %c0_0] : memref<32x640xf32, #tpu.memory_space<vmem>>, vector<32x128xf32>
    tpu.vector_store %arg11[%c0, %c0_0], %0 {strides = array<i32>} : memref<32x640xf32, #tpu.memory_space<vmem>>, vector<32x128xf32>,
    %cst_1 = arith.constant 0.000000e+00 : f32
    %2 = vector.broadcast %cst_1 : f32 to vector<32x128xf32>
    %c0_2 = arith.constant 0 : index
    %c512 = arith.constant 512 : index
    %3 = vector.load %arg11[%c0_2, %c512] : memref<32x640xf32, #tpu.memory_space<vmem>>, vector<32x128xf32>
    tpu.vector_store %arg11[%c0_2, %c512], %2 {strides = array<i32>} : memref<32x640xf32, #tpu.memory_space<vmem>>, vector<32x128xf32>,
    %c0_3 = arith.constant 0 : index
    %c0_4 = arith.constant 0 : index
    %4 = vector.load %arg2[%c0_3, %c0_4] : memref<5x384xf32, #tpu.memory_space<vmem>>, vector<1x384xf32>
    %5 = vector.shape_cast %4 : vector<1x384xf32> to vector<1x384xf32>
    %6 = vector.broadcast %5 : vector<1x384xf32> to vector<8x384xf32>
    %c1 = arith.constant 1 : index
    %c0_5 = arith.constant 0 : index
    %7 = vector.load %arg2[%c1, %c0_5] : memref<5x384xf32, #tpu.memory_space<vmem>>, vector<1x384xf32>
    %cst_6 = arith.constant 0.000000e+00 : f32
    %8 = vector.broadcast %cst_6 : f32 to vector<1x384xf32>
    %9 = arith.cmpf one, %7, %8 : vector<1x384xf32>
    %10 = vector.shape_cast %9 : vector<1x384xi1> to vector<1x384xi1>
    %11 = vector.broadcast %10 : vector<1x384xi1> to vector<8x384xi1>
    %c2 = arith.constant 2 : index
    %c0_7 = arith.constant 0 : index
    %12 = vector.load %arg2[%c2, %c0_7] : memref<5x384xf32, #tpu.memory_space<vmem>>, vector<1x384xf32>
    %cst_8 = arith.constant 0.000000e+00 : f32
    %13 = vector.broadcast %cst_8 : f32 to vector<1x384xf32>
    %14 = arith.cmpf one, %12, %13 : vector<1x384xf32>
    %15 = vector.shape_cast %14 : vector<1x384xi1> to vector<1x384xi1>
    %16 = vector.broadcast %15 : vector<1x384xi1> to vector<8x384xi1>
    %c3 = arith.constant 3 : index
    %c0_9 = arith.constant 0 : index
    %17 = vector.load %arg2[%c3, %c0_9] : memref<5x384xf32, #tpu.memory_space<vmem>>, vector<1x384xf32>
    %cst_10 = arith.constant 0.000000e+00 : f32
    %18 = vector.broadcast %cst_10 : f32 to vector<1x384xf32>
    %19 = arith.cmpf one, %17, %18 : vector<1x384xf32>
    %20 = vector.shape_cast %19 : vector<1x384xi1> to vector<1x384xi1>
    %21 = vector.broadcast %20 : vector<1x384xi1> to vector<8x384xi1>
    %c4 = arith.constant 4 : index
    %c0_11 = arith.constant 0 : index
    %22 = vector.load %arg2[%c4, %c0_11] : memref<5x384xf32, #tpu.memory_space<vmem>>, vector<1x384xf32>
    %cst_12 = arith.constant 0.000000e+00 : f32
    %23 = vector.broadcast %cst_12 : f32 to vector<1x384xf32>
    %24 = arith.cmpf one, %22, %23 : vector<1x384xf32>
    %25 = vector.shape_cast %24 : vector<1x384xi1> to vector<1x384xi1>
    %26 = vector.broadcast %25 : vector<1x384xi1> to vector<8x384xi1>
    %c0_13 = arith.constant 0 : index
    %c0_14 = arith.constant 0 : index
    %27 = vector.load %arg3[%c0_13, %c0_14] : memref<8x8xf32, #tpu.memory_space<vmem>>, vector<8x8xf32>
    %c0_15 = arith.constant 0 : index
    %c0_16 = arith.constant 0 : index
    %c0_17 = arith.constant 0 : index
    %28 = vector.load %arg1[%c0_15, %c0_16, %c0_17] : memref<1x8x384xf32, #tpu.memory_space<vmem>>, vector<1x8x384xf32>
    %29 = vector.shape_cast %28 : vector<1x8x384xf32> to vector<8x384xf32>
    %cst_18 = arith.constant dense<0.000000e+00> : vector<8x384xf32>
    %30 = tpu.matmul %27, %29, %cst_18 {dimension_numbers = #tpu.dot_dimension_numbers<[1], [0], [0], [1], [0, 0, 1, 1], [], []>} : vector<8x8xf32>, vector<8x384xf32>, vector<8x384xf32> -> vector<8x384xf32>
    %c0_19 = arith.constant 0 : index
    %c0_20 = arith.constant 0 : index
    %31 = vector.load %arg4[%c0_19, %c0_20] : memref<8x1xf32, #tpu.memory_space<vmem>>, vector<8x1xf32>
    %32 = vector.broadcast %31 : vector<8x1xf32> to vector<8x384xf32>
    %33 = arith.addf %30, %32 : vector<8x384xf32>
    %c0_21 = arith.constant 0 : index
    %c128 = arith.constant 128 : index
    %34 = vector.load %arg11[%c0_21, %c128] : memref<32x640xf32, #tpu.memory_space<vmem>>, vector<8x384xf32>
    tpu.vector_store %arg11[%c0_21, %c128], %33 {strides = array<i32>} : memref<32x640xf32, #tpu.memory_space<vmem>>, vector<8x384xf32>,
    %c0_22 = arith.constant 0 : index
    %c109 = arith.constant 109 : index
    %35 = vector.load %arg11[%c0_22, %c109] : memref<32x640xf32, #tpu.memory_space<vmem>>, vector<8x384xf32>
    %c0_23 = arith.constant 0 : index
    %c0_24 = arith.constant 0 : index
    %36 = vector.load %arg12[%c0_23, %c0_24] : memref<216x384xf32, #tpu.memory_space<vmem>>, vector<8x384xf32>
    tpu.vector_store %arg12[%c0_23, %c0_24], %35 {strides = array<i32>} : memref<216x384xf32, #tpu.memory_space<vmem>>, vector<8x384xf32>,
    %c0_25 = arith.constant 0 : index
    %c110 = arith.constant 110 : index
    %37 = vector.load %arg11[%c0_25, %c110] : memref<32x640xf32, #tpu.memory_space<vmem>>, vector<8x384xf32>
    %c8 = arith.constant 8 : index
    %c0_26 = arith.constant 0 : index
    %38 = vector.load %arg12[%c8, %c0_26] : memref<216x384xf32, #tpu.memory_space<vmem>>, vector<8x384xf32>
    tpu.vector_store %arg12[%c8, %c0_26], %37 {strides = array<i32>} : memref<216x384xf32, #tpu.memory_space<vmem>>, vector<8x384xf32>,
    %c0_27 = arith.constant 0 : index
    %c111 = arith.constant 111 : index
    %39 = vector.load %arg11[%c0_27, %c111] : memref<32x640xf32, #tpu.memory_space<vmem>>, vector<8x384xf32>
    %c16 = arith.constant 16 : index
    %c0_28 = arith.constant 0 : index
    %40 = vector.load %arg12[%c16, %c0_28] : memref<216x384xf32, #tpu.memory_space<vmem>>, vector<8x384xf32>
    tpu.vector_store %arg12[%c16, %c0_28], %39 {strides = array<i32>} : memref<216x384xf32, #tpu.memory_space<vmem>>, vector<8x384xf32>,
    %c0_29 = arith.constant 0 : index
    %c127 = arith.constant 127 : index
    %41 = vector.load %arg11[%c0_29, %c127] : memref<32x640xf32, #tpu.memory_space<vmem>>, vector<8x384xf32>
    %c24 = arith.constant 24 : index
    %c0_30 = arith.constant 0 : index
    %42 = vector.load %arg12[%c24, %c0_30] : memref<216x384xf32, #tpu.memory_space<vmem>>, vector<8x384xf32>
    tpu.vector_store %arg12[%c24, %c0_30], %41 {strides = array<i32>} : memref<216x384xf32, #tpu.memory_space<vmem>>, vector<8x384xf32>,
    %c0_31 = arith.constant 0 : index
    %c128_32 = arith.constant 128 : index
    %43 = vector.load %arg11[%c0_31, %c128_32] : memref<32x640xf32, #tpu.memory_space<vmem>>, vector<8x384xf32>
    %c32 = arith.constant 32 : index
    %c0_33 = arith.constant 0 : index
    %44 = vector.load %arg12[%c32, %c0_33] : memref<216x384xf32, #tpu.memory_space<vmem>>, vector<8x384xf32>
    tpu.vector_store %arg12[%c32, %c0_33], %43 {strides = array<i32>} : memref<216x384xf32, #tpu.memory_space<vmem>>, vector<8x384xf32>,
    %c0_34 = arith.constant 0 : index
    %c129 = arith.constant 129 : index
    %45 = vector.load %arg11[%c0_34, %c129] : memref<32x640xf32, #tpu.memory_space<vmem>>, vector<8x384xf32>
    %c40 = arith.constant 40 : index
    %c0_35 = arith.constant 0 : index
    %46 = vector.load %arg12[%c40, %c0_35] : memref<216x384xf32, #tpu.memory_space<vmem>>, vector<8x384xf32>
    tpu.vector_store %arg12[%c40, %c0_35], %45 {strides = array<i32>} : memref<216x384xf32, #tpu.memory_space<vmem>>, vector<8x384xf32>,
    %c0_36 = arith.constant 0 : index
    %c145 = arith.constant 145 : index
    %47 = vector.load %arg11[%c0_36, %c145] : memref<32x640xf32, #tpu.memory_space<vmem>>, vector<8x384xf32>
    %c48 = arith.constant 48 : index
    %c0_37 = arith.constant 0 : index
    %48 = vector.load %arg12[%c48, %c0_37] : memref<216x384xf32, #tpu.memory_space<vmem>>, vector<8x384xf32>
    tpu.vector_store %arg12[%c48, %c0_37], %47 {strides = array<i32>} : memref<216x384xf32, #tpu.memory_space<vmem>>, vector<8x384xf32>,
    %c0_38 = arith.constant 0 : index
    %c146 = arith.constant 146 : index
    %49 = vector.load %arg11[%c0_38, %c146] : memref<32x640xf32, #tpu.memory_space<vmem>>, vector<8x384xf32>
    %c56 = arith.constant 56 : index
    %c0_39 = arith.constant 0 : index
    %50 = vector.load %arg12[%c56, %c0_39] : memref<216x384xf32, #tpu.memory_space<vmem>>, vector<8x384xf32>
    tpu.vector_store %arg12[%c56, %c0_39], %49 {strides = array<i32>} : memref<216x384xf32, #tpu.memory_space<vmem>>, vector<8x384xf32>,
    %c0_40 = arith.constant 0 : index
    %c147 = arith.constant 147 : index
    %51 = vector.load %arg11[%c0_40, %c147] : memref<32x640xf32, #tpu.memory_space<vmem>>, vector<8x384xf32>
    %c64 = arith.constant 64 : index
    %c0_41 = arith.constant 0 : index
    %52 = vector.load %arg12[%c64, %c0_41] : memref<216x384xf32, #tpu.memory_space<vmem>>, vector<8x384xf32>
    tpu.vector_store %arg12[%c64, %c0_41], %51 {strides = array<i32>} : memref<216x384xf32, #tpu.memory_space<vmem>>, vector<8x384xf32>,
    %c0_42 = arith.constant 0 : index
    %c0_43 = arith.constant 0 : index
    %53 = vector.load %arg5[%c0_42, %c0_43] : memref<8x72xf32, #tpu.memory_space<vmem>>, vector<8x72xf32>
    %c0_44 = arith.constant 0 : index
    %c0_45 = arith.constant 0 : index
    %54 = vector.load %arg12[%c0_44, %c0_45] : memref<216x384xf32, #tpu.memory_space<vmem>>, vector<72x384xf32>
    %cst_46 = arith.constant dense<0.000000e+00> : vector<8x384xf32>
    %55 = tpu.matmul %53, %54, %cst_46 {dimension_numbers = #tpu.dot_dimension_numbers<[1], [0], [0], [1], [0, 0, 1, 1], [], []>} : vector<8x72xf32>, vector<72x384xf32>, vector<8x384xf32> -> vector<8x384xf32>
    %56 = arith.mulf %55, %6 : vector<8x384xf32>
    %cst_47 = arith.constant dense<0.000000e+00> : vector<8xf32>
    %57 = vector.multi_reduction <add>, %56, %cst_47 [1] : vector<8x384xf32> to vector<8xf32>
    %58 = vector.shape_cast %57 : vector<8xf32> to vector<8x1xf32>
    %cst_48 = arith.constant 3.906250e-03 : f32
    %59 = vector.broadcast %cst_48 : f32 to vector<8x1xf32>
    %60 = arith.mulf %58, %59 : vector<8x1xf32>
    %61 = arith.mulf %56, %55 : vector<8x384xf32>
    %cst_49 = arith.constant dense<0.000000e+00> : vector<8xf32>
    %62 = vector.multi_reduction <add>, %61, %cst_49 [1] : vector<8x384xf32> to vector<8xf32>
    %63 = vector.shape_cast %62 : vector<8xf32> to vector<8x1xf32>
    %cst_50 = arith.constant 3.906250e-03 : f32
    %64 = vector.broadcast %cst_50 : f32 to vector<8x1xf32>
    %65 = arith.mulf %63, %64 : vector<8x1xf32>
    %66 = arith.mulf %60, %60 : vector<8x1xf32>
    %67 = arith.subf %65, %66 : vector<8x1xf32>
    %68 = vector.broadcast %60 : vector<8x1xf32> to vector<8x384xf32>
    %69 = arith.subf %55, %68 : vector<8x384xf32>
    %cst_51 = arith.constant 9.99999974E-6 : f32
    %70 = vector.broadcast %cst_51 : f32 to vector<8x1xf32>
    %71 = arith.addf %67, %70 : vector<8x1xf32>
    %72 = math.rsqrt %71 : vector<8x1xf32>
    %73 = vector.broadcast %72 : vector<8x1xf32> to vector<8x384xf32>
    %74 = arith.mulf %69, %73 : vector<8x384xf32>
    %cst_52 = arith.constant 0.000000e+00 : f32
    %75 = vector.broadcast %cst_52 : f32 to vector<8x384xf32>
    %76 = arith.maximumf %74, %75 : vector<8x384xf32>
    %c8_53 = arith.constant 8 : index
    %c128_54 = arith.constant 128 : index
    %77 = vector.load %arg11[%c8_53, %c128_54] : memref<32x640xf32, #tpu.memory_space<vmem>>, vector<8x384xf32>
    tpu.vector_store %arg11[%c8_53, %c128_54], %76 {strides = array<i32>} : memref<32x640xf32, #tpu.memory_space<vmem>>, vector<8x384xf32>,
    %c8_55 = arith.constant 8 : index
    %c128_56 = arith.constant 128 : index
    %78 = vector.load %arg11[%c8_55, %c128_56] : memref<32x640xf32, #tpu.memory_space<vmem>>, vector<8x384xf32>
    %c8_57 = arith.constant 8 : index
    %c130 = arith.constant 130 : index
    %79 = vector.load %arg11[%c8_57, %c130] : memref<32x640xf32, #tpu.memory_space<vmem>>, vector<8x384xf32>
    %c8_58 = arith.constant 8 : index
    %c126 = arith.constant 126 : index
    %80 = vector.load %arg11[%c8_58, %c126] : memref<32x640xf32, #tpu.memory_space<vmem>>, vector<8x384xf32>
    %81 = arith.select %16, %80, %78 : vector<8x384xi1>, vector<8x384xf32>
    %82 = arith.select %11, %79, %81 : vector<8x384xi1>, vector<8x384xf32>
    %c8_59 = arith.constant 8 : index
    %c128_60 = arith.constant 128 : index
    %83 = vector.load %arg11[%c8_59, %c128_60] : memref<32x640xf32, #tpu.memory_space<vmem>>, vector<8x384xf32>
    tpu.vector_store %arg11[%c8_59, %c128_60], %82 {strides = array<i32>} : memref<32x640xf32, #tpu.memory_space<vmem>>, vector<8x384xf32>,
    %c8_61 = arith.constant 8 : index
    %c128_62 = arith.constant 128 : index
    %84 = vector.load %arg11[%c8_61, %c128_62] : memref<32x640xf32, #tpu.memory_space<vmem>>, vector<8x384xf32>
    %c8_63 = arith.constant 8 : index
    %c164 = arith.constant 164 : index
    %85 = vector.load %arg11[%c8_63, %c164] : memref<32x640xf32, #tpu.memory_space<vmem>>, vector<8x384xf32>
    %c8_64 = arith.constant 8 : index
    %c92 = arith.constant 92 : index
    %86 = vector.load %arg11[%c8_64, %c92] : memref<32x640xf32, #tpu.memory_space<vmem>>, vector<8x384xf32>
    %87 = arith.select %26, %86, %84 : vector<8x384xi1>, vector<8x384xf32>
    %88 = arith.select %21, %85, %87 : vector<8x384xi1>, vector<8x384xf32>
    %c8_65 = arith.constant 8 : index
    %c128_66 = arith.constant 128 : index
    %89 = vector.load %arg11[%c8_65, %c128_66] : memref<32x640xf32, #tpu.memory_space<vmem>>, vector<8x384xf32>
    tpu.vector_store %arg11[%c8_65, %c128_66], %88 {strides = array<i32>} : memref<32x640xf32, #tpu.memory_space<vmem>>, vector<8x384xf32>,
    %c8_67 = arith.constant 8 : index
    %c109_68 = arith.constant 109 : index
    %90 = vector.load %arg11[%c8_67, %c109_68] : memref<32x640xf32, #tpu.memory_space<vmem>>, vector<8x384xf32>
    %c72 = arith.constant 72 : index
    %c0_69 = arith.constant 0 : index
    %91 = vector.load %arg12[%c72, %c0_69] : memref<216x384xf32, #tpu.memory_space<vmem>>, vector<8x384xf32>
    tpu.vector_store %arg12[%c72, %c0_69], %90 {strides = array<i32>} : memref<216x384xf32, #tpu.memory_space<vmem>>, vector<8x384xf32>,
    %c8_70 = arith.constant 8 : index
    %c110_71 = arith.constant 110 : index
    %92 = vector.load %arg11[%c8_70, %c110_71] : memref<32x640xf32, #tpu.memory_space<vmem>>, vector<8x384xf32>
    %c80 = arith.constant 80 : index
    %c0_72 = arith.constant 0 : index
    %93 = vector.load %arg12[%c80, %c0_72] : memref<216x384xf32, #tpu.memory_space<vmem>>, vector<8x384xf32>
    tpu.vector_store %arg12[%c80, %c0_72], %92 {strides = array<i32>} : memref<216x384xf32, #tpu.memory_space<vmem>>, vector<8x384xf32>,
    %c8_73 = arith.constant 8 : index
    %c111_74 = arith.constant 111 : index
    %94 = vector.load %arg11[%c8_73, %c111_74] : memref<32x640xf32, #tpu.memory_space<vmem>>, vector<8x384xf32>
    %c88 = arith.constant 88 : index
    %c0_75 = arith.constant 0 : index
    %95 = vector.load %arg12[%c88, %c0_75] : memref<216x384xf32, #tpu.memory_space<vmem>>, vector<8x384xf32>
    tpu.vector_store %arg12[%c88, %c0_75], %94 {strides = array<i32>} : memref<216x384xf32, #tpu.memory_space<vmem>>, vector<8x384xf32>,
    %c8_76 = arith.constant 8 : index
    %c127_77 = arith.constant 127 : index
    %96 = vector.load %arg11[%c8_76, %c127_77] : memref<32x640xf32, #tpu.memory_space<vmem>>, vector<8x384xf32>
    %c96 = arith.constant 96 : index
    %c0_78 = arith.constant 0 : index
    %97 = vector.load %arg12[%c96, %c0_78] : memref<216x384xf32, #tpu.memory_space<vmem>>, vector<8x384xf32>
    tpu.vector_store %arg12[%c96, %c0_78], %96 {strides = array<i32>} : memref<216x384xf32, #tpu.memory_space<vmem>>, vector<8x384xf32>,
    %c8_79 = arith.constant 8 : index
    %c128_80 = arith.constant 128 : index
    %98 = vector.load %arg11[%c8_79, %c128_80] : memref<32x640xf32, #tpu.memory_space<vmem>>, vector<8x384xf32>
    %c104 = arith.constant 104 : index
    %c0_81 = arith.constant 0 : index
    %99 = vector.load %arg12[%c104, %c0_81] : memref<216x384xf32, #tpu.memory_space<vmem>>, vector<8x384xf32>
    tpu.vector_store %arg12[%c104, %c0_81], %98 {strides = array<i32>} : memref<216x384xf32, #tpu.memory_space<vmem>>, vector<8x384xf32>,
    %c8_82 = arith.constant 8 : index
    %c129_83 = arith.constant 129 : index
    %100 = vector.load %arg11[%c8_82, %c129_83] : memref<32x640xf32, #tpu.memory_space<vmem>>, vector<8x384xf32>
    %c112 = arith.constant 112 : index
    %c0_84 = arith.constant 0 : index
    %101 = vector.load %arg12[%c112, %c0_84] : memref<216x384xf32, #tpu.memory_space<vmem>>, vector<8x384xf32>
    tpu.vector_store %arg12[%c112, %c0_84], %100 {strides = array<i32>} : memref<216x384xf32, #tpu.memory_space<vmem>>, vector<8x384xf32>,
    %c8_85 = arith.constant 8 : index
    %c145_86 = arith.constant 145 : index
    %102 = vector.load %arg11[%c8_85, %c145_86] : memref<32x640xf32, #tpu.memory_space<vmem>>, vector<8x384xf32>
    %c120 = arith.constant 120 : index
    %c0_87 = arith.constant 0 : index
    %103 = vector.load %arg12[%c120, %c0_87] : memref<216x384xf32, #tpu.memory_space<vmem>>, vector<8x384xf32>
    tpu.vector_store %arg12[%c120, %c0_87], %102 {strides = array<i32>} : memref<216x384xf32, #tpu.memory_space<vmem>>, vector<8x384xf32>,
    %c8_88 = arith.constant 8 : index
    %c146_89 = arith.constant 146 : index
    %104 = vector.load %arg11[%c8_88, %c146_89] : memref<32x640xf32, #tpu.memory_space<vmem>>, vector<8x384xf32>
    %c128_90 = arith.constant 128 : index
    %c0_91 = arith.constant 0 : index
    %105 = vector.load %arg12[%c128_90, %c0_91] : memref<216x384xf32, #tpu.memory_space<vmem>>, vector<8x384xf32>
    tpu.vector_store %arg12[%c128_90, %c0_91], %104 {strides = array<i32>} : memref<216x384xf32, #tpu.memory_space<vmem>>, vector<8x384xf32>,
    %c8_92 = arith.constant 8 : index
    %c147_93 = arith.constant 147 : index
    %106 = vector.load %arg11[%c8_92, %c147_93] : memref<32x640xf32, #tpu.memory_space<vmem>>, vector<8x384xf32>
    %c136 = arith.constant 136 : index
    %c0_94 = arith.constant 0 : index
    %107 = vector.load %arg12[%c136, %c0_94] : memref<216x384xf32, #tpu.memory_space<vmem>>, vector<8x384xf32>
    tpu.vector_store %arg12[%c136, %c0_94], %106 {strides = array<i32>} : memref<216x384xf32, #tpu.memory_space<vmem>>, vector<8x384xf32>,
    %c0_95 = arith.constant 0 : index
    %c0_96 = arith.constant 0 : index
    %108 = vector.load %arg6[%c0_95, %c0_96] : memref<8x144xf32, #tpu.memory_space<vmem>>, vector<8x144xf32>
    %c0_97 = arith.constant 0 : index
    %c0_98 = arith.constant 0 : index
    %109 = vector.load %arg12[%c0_97, %c0_98] : memref<216x384xf32, #tpu.memory_space<vmem>>, vector<144x384xf32>
    %cst_99 = arith.constant dense<0.000000e+00> : vector<8x384xf32>
    %110 = tpu.matmul %108, %109, %cst_99 {dimension_numbers = #tpu.dot_dimension_numbers<[1], [0], [0], [1], [0, 0, 1, 1], [], []>} : vector<8x144xf32>, vector<144x384xf32>, vector<8x384xf32> -> vector<8x384xf32>
    %111 = arith.mulf %110, %6 : vector<8x384xf32>
    %cst_100 = arith.constant dense<0.000000e+00> : vector<8xf32>
    %112 = vector.multi_reduction <add>, %111, %cst_100 [1] : vector<8x384xf32> to vector<8xf32>
    %113 = vector.shape_cast %112 : vector<8xf32> to vector<8x1xf32>
    %cst_101 = arith.constant 3.906250e-03 : f32
    %114 = vector.broadcast %cst_101 : f32 to vector<8x1xf32>
    %115 = arith.mulf %113, %114 : vector<8x1xf32>
    %116 = arith.mulf %111, %110 : vector<8x384xf32>
    %cst_102 = arith.constant dense<0.000000e+00> : vector<8xf32>
    %117 = vector.multi_reduction <add>, %116, %cst_102 [1] : vector<8x384xf32> to vector<8xf32>
    %118 = vector.shape_cast %117 : vector<8xf32> to vector<8x1xf32>
    %cst_103 = arith.constant 3.906250e-03 : f32
    %119 = vector.broadcast %cst_103 : f32 to vector<8x1xf32>
    %120 = arith.mulf %118, %119 : vector<8x1xf32>
    %121 = arith.mulf %115, %115 : vector<8x1xf32>
    %122 = arith.subf %120, %121 : vector<8x1xf32>
    %123 = vector.broadcast %115 : vector<8x1xf32> to vector<8x384xf32>
    %124 = arith.subf %110, %123 : vector<8x384xf32>
    %cst_104 = arith.constant 9.99999974E-6 : f32
    %125 = vector.broadcast %cst_104 : f32 to vector<8x1xf32>
    %126 = arith.addf %122, %125 : vector<8x1xf32>
    %127 = math.rsqrt %126 : vector<8x1xf32>
    %128 = vector.broadcast %127 : vector<8x1xf32> to vector<8x384xf32>
    %129 = arith.mulf %124, %128 : vector<8x384xf32>
    %cst_105 = arith.constant 0.000000e+00 : f32
    %130 = vector.broadcast %cst_105 : f32 to vector<8x384xf32>
    %131 = arith.maximumf %129, %130 : vector<8x384xf32>
    %c16_106 = arith.constant 16 : index
    %c128_107 = arith.constant 128 : index
    %132 = vector.load %arg11[%c16_106, %c128_107] : memref<32x640xf32, #tpu.memory_space<vmem>>, vector<8x384xf32>
    tpu.vector_store %arg11[%c16_106, %c128_107], %131 {strides = array<i32>} : memref<32x640xf32, #tpu.memory_space<vmem>>, vector<8x384xf32>,
    %c16_108 = arith.constant 16 : index
    %c128_109 = arith.constant 128 : index
    %133 = vector.load %arg11[%c16_108, %c128_109] : memref<32x640xf32, #tpu.memory_space<vmem>>, vector<8x384xf32>
    %c16_110 = arith.constant 16 : index
    %c130_111 = arith.constant 130 : index
    %134 = vector.load %arg11[%c16_110, %c130_111] : memref<32x640xf32, #tpu.memory_space<vmem>>, vector<8x384xf32>
    %c16_112 = arith.constant 16 : index
    %c126_113 = arith.constant 126 : index
    %135 = vector.load %arg11[%c16_112, %c126_113] : memref<32x640xf32, #tpu.memory_space<vmem>>, vector<8x384xf32>
    %136 = arith.select %16, %135, %133 : vector<8x384xi1>, vector<8x384xf32>
    %137 = arith.select %11, %134, %136 : vector<8x384xi1>, vector<8x384xf32>
    %c16_114 = arith.constant 16 : index
    %c128_115 = arith.constant 128 : index
    %138 = vector.load %arg11[%c16_114, %c128_115] : memref<32x640xf32, #tpu.memory_space<vmem>>, vector<8x384xf32>
    tpu.vector_store %arg11[%c16_114, %c128_115], %137 {strides = array<i32>} : memref<32x640xf32, #tpu.memory_space<vmem>>, vector<8x384xf32>,
    %c16_116 = arith.constant 16 : index
    %c128_117 = arith.constant 128 : index
    %139 = vector.load %arg11[%c16_116, %c128_117] : memref<32x640xf32, #tpu.memory_space<vmem>>, vector<8x384xf32>
    %c16_118 = arith.constant 16 : index
    %c164_119 = arith.constant 164 : index
    %140 = vector.load %arg11[%c16_118, %c164_119] : memref<32x640xf32, #tpu.memory_space<vmem>>, vector<8x384xf32>
    %c16_120 = arith.constant 16 : index
    %c92_121 = arith.constant 92 : index
    %141 = vector.load %arg11[%c16_120, %c92_121] : memref<32x640xf32, #tpu.memory_space<vmem>>, vector<8x384xf32>
    %142 = arith.select %26, %141, %139 : vector<8x384xi1>, vector<8x384xf32>
    %143 = arith.select %21, %140, %142 : vector<8x384xi1>, vector<8x384xf32>
    %c16_122 = arith.constant 16 : index
    %c128_123 = arith.constant 128 : index
    %144 = vector.load %arg11[%c16_122, %c128_123] : memref<32x640xf32, #tpu.memory_space<vmem>>, vector<8x384xf32>
    tpu.vector_store %arg11[%c16_122, %c128_123], %143 {strides = array<i32>} : memref<32x640xf32, #tpu.memory_space<vmem>>, vector<8x384xf32>,
    %c16_124 = arith.constant 16 : index
    %c109_125 = arith.constant 109 : index
    %145 = vector.load %arg11[%c16_124, %c109_125] : memref<32x640xf32, #tpu.memory_space<vmem>>, vector<8x384xf32>
    %c144 = arith.constant 144 : index
    %c0_126 = arith.constant 0 : index
    %146 = vector.load %arg12[%c144, %c0_126] : memref<216x384xf32, #tpu.memory_space<vmem>>, vector<8x384xf32>
    tpu.vector_store %arg12[%c144, %c0_126], %145 {strides = array<i32>} : memref<216x384xf32, #tpu.memory_space<vmem>>, vector<8x384xf32>,
    %c16_127 = arith.constant 16 : index
    %c110_128 = arith.constant 110 : index
    %147 = vector.load %arg11[%c16_127, %c110_128] : memref<32x640xf32, #tpu.memory_space<vmem>>, vector<8x384xf32>
    %c152 = arith.constant 152 : index
    %c0_129 = arith.constant 0 : index
    %148 = vector.load %arg12[%c152, %c0_129] : memref<216x384xf32, #tpu.memory_space<vmem>>, vector<8x384xf32>
    tpu.vector_store %arg12[%c152, %c0_129], %147 {strides = array<i32>} : memref<216x384xf32, #tpu.memory_space<vmem>>, vector<8x384xf32>,
    %c16_130 = arith.constant 16 : index
    %c111_131 = arith.constant 111 : index
    %149 = vector.load %arg11[%c16_130, %c111_131] : memref<32x640xf32, #tpu.memory_space<vmem>>, vector<8x384xf32>
    %c160 = arith.constant 160 : index
    %c0_132 = arith.constant 0 : index
    %150 = vector.load %arg12[%c160, %c0_132] : memref<216x384xf32, #tpu.memory_space<vmem>>, vector<8x384xf32>
    tpu.vector_store %arg12[%c160, %c0_132], %149 {strides = array<i32>} : memref<216x384xf32, #tpu.memory_space<vmem>>, vector<8x384xf32>,
    %c16_133 = arith.constant 16 : index
    %c127_134 = arith.constant 127 : index
    %151 = vector.load %arg11[%c16_133, %c127_134] : memref<32x640xf32, #tpu.memory_space<vmem>>, vector<8x384xf32>
    %c168 = arith.constant 168 : index
    %c0_135 = arith.constant 0 : index
    %152 = vector.load %arg12[%c168, %c0_135] : memref<216x384xf32, #tpu.memory_space<vmem>>, vector<8x384xf32>
    tpu.vector_store %arg12[%c168, %c0_135], %151 {strides = array<i32>} : memref<216x384xf32, #tpu.memory_space<vmem>>, vector<8x384xf32>,
    %c16_136 = arith.constant 16 : index
    %c128_137 = arith.constant 128 : index
    %153 = vector.load %arg11[%c16_136, %c128_137] : memref<32x640xf32, #tpu.memory_space<vmem>>, vector<8x384xf32>
    %c176 = arith.constant 176 : index
    %c0_138 = arith.constant 0 : index
    %154 = vector.load %arg12[%c176, %c0_138] : memref<216x384xf32, #tpu.memory_space<vmem>>, vector<8x384xf32>
    tpu.vector_store %arg12[%c176, %c0_138], %153 {strides = array<i32>} : memref<216x384xf32, #tpu.memory_space<vmem>>, vector<8x384xf32>,
    %c16_139 = arith.constant 16 : index
    %c129_140 = arith.constant 129 : index
    %155 = vector.load %arg11[%c16_139, %c129_140] : memref<32x640xf32, #tpu.memory_space<vmem>>, vector<8x384xf32>
    %c184 = arith.constant 184 : index
    %c0_141 = arith.constant 0 : index
    %156 = vector.load %arg12[%c184, %c0_141] : memref<216x384xf32, #tpu.memory_space<vmem>>, vector<8x384xf32>
    tpu.vector_store %arg12[%c184, %c0_141], %155 {strides = array<i32>} : memref<216x384xf32, #tpu.memory_space<vmem>>, vector<8x384xf32>,
    %c16_142 = arith.constant 16 : index
    %c145_143 = arith.constant 145 : index
    %157 = vector.load %arg11[%c16_142, %c145_143] : memref<32x640xf32, #tpu.memory_space<vmem>>, vector<8x384xf32>
    %c192 = arith.constant 192 : index
    %c0_144 = arith.constant 0 : index
    %158 = vector.load %arg12[%c192, %c0_144] : memref<216x384xf32, #tpu.memory_space<vmem>>, vector<8x384xf32>
    tpu.vector_store %arg12[%c192, %c0_144], %157 {strides = array<i32>} : memref<216x384xf32, #tpu.memory_space<vmem>>, vector<8x384xf32>,
    %c16_145 = arith.constant 16 : index
    %c146_146 = arith.constant 146 : index
    %159 = vector.load %arg11[%c16_145, %c146_146] : memref<32x640xf32, #tpu.memory_space<vmem>>, vector<8x384xf32>
    %c200 = arith.constant 200 : index
    %c0_147 = arith.constant 0 : index
    %160 = vector.load %arg12[%c200, %c0_147] : memref<216x384xf32, #tpu.memory_space<vmem>>, vector<8x384xf32>
    tpu.vector_store %arg12[%c200, %c0_147], %159 {strides = array<i32>} : memref<216x384xf32, #tpu.memory_space<vmem>>, vector<8x384xf32>,
    %c16_148 = arith.constant 16 : index
    %c147_149 = arith.constant 147 : index
    %161 = vector.load %arg11[%c16_148, %c147_149] : memref<32x640xf32, #tpu.memory_space<vmem>>, vector<8x384xf32>
    %c208 = arith.constant 208 : index
    %c0_150 = arith.constant 0 : index
    %162 = vector.load %arg12[%c208, %c0_150] : memref<216x384xf32, #tpu.memory_space<vmem>>, vector<8x384xf32>
    tpu.vector_store %arg12[%c208, %c0_150], %161 {strides = array<i32>} : memref<216x384xf32, #tpu.memory_space<vmem>>, vector<8x384xf32>,
    %c0_151 = arith.constant 0 : index
    %c0_152 = arith.constant 0 : index
    %163 = vector.load %arg7[%c0_151, %c0_152] : memref<8x216xf32, #tpu.memory_space<vmem>>, vector<8x216xf32>
    %c0_153 = arith.constant 0 : index
    %c0_154 = arith.constant 0 : index
    %164 = vector.load %arg12[%c0_153, %c0_154] : memref<216x384xf32, #tpu.memory_space<vmem>>, vector<216x384xf32>
    %cst_155 = arith.constant dense<0.000000e+00> : vector<8x384xf32>
    %165 = tpu.matmul %163, %164, %cst_155 {dimension_numbers = #tpu.dot_dimension_numbers<[1], [0], [0], [1], [0, 0, 1, 1], [], []>} : vector<8x216xf32>, vector<216x384xf32>, vector<8x384xf32> -> vector<8x384xf32>
    %166 = arith.mulf %165, %6 : vector<8x384xf32>
    %cst_156 = arith.constant dense<0.000000e+00> : vector<8xf32>
    %167 = vector.multi_reduction <add>, %166, %cst_156 [1] : vector<8x384xf32> to vector<8xf32>
    %168 = vector.shape_cast %167 : vector<8xf32> to vector<8x1xf32>
    %cst_157 = arith.constant 3.906250e-03 : f32
    %169 = vector.broadcast %cst_157 : f32 to vector<8x1xf32>
    %170 = arith.mulf %168, %169 : vector<8x1xf32>
    %171 = arith.mulf %166, %165 : vector<8x384xf32>
    %cst_158 = arith.constant dense<0.000000e+00> : vector<8xf32>
    %172 = vector.multi_reduction <add>, %171, %cst_158 [1] : vector<8x384xf32> to vector<8xf32>
    %173 = vector.shape_cast %172 : vector<8xf32> to vector<8x1xf32>
    %cst_159 = arith.constant 3.906250e-03 : f32
    %174 = vector.broadcast %cst_159 : f32 to vector<8x1xf32>
    %175 = arith.mulf %173, %174 : vector<8x1xf32>
    %176 = arith.mulf %170, %170 : vector<8x1xf32>
    %177 = arith.subf %175, %176 : vector<8x1xf32>
    %178 = vector.broadcast %170 : vector<8x1xf32> to vector<8x384xf32>
    %179 = arith.subf %165, %178 : vector<8x384xf32>
    %cst_160 = arith.constant 9.99999974E-6 : f32
    %180 = vector.broadcast %cst_160 : f32 to vector<8x1xf32>
    %181 = arith.addf %177, %180 : vector<8x1xf32>
    %182 = math.rsqrt %181 : vector<8x1xf32>
    %183 = vector.broadcast %182 : vector<8x1xf32> to vector<8x384xf32>
    %184 = arith.mulf %179, %183 : vector<8x384xf32>
    %cst_161 = arith.constant 0.000000e+00 : f32
    %185 = vector.broadcast %cst_161 : f32 to vector<8x384xf32>
    %186 = arith.maximumf %184, %185 : vector<8x384xf32>
    %c24_162 = arith.constant 24 : index
    %c128_163 = arith.constant 128 : index
    %187 = vector.load %arg11[%c24_162, %c128_163] : memref<32x640xf32, #tpu.memory_space<vmem>>, vector<8x384xf32>
    tpu.vector_store %arg11[%c24_162, %c128_163], %186 {strides = array<i32>} : memref<32x640xf32, #tpu.memory_space<vmem>>, vector<8x384xf32>,
    %c0_164 = arith.constant 0 : index
    %c0_165 = arith.constant 0 : index
    %188 = vector.load %arg8[%c0_164, %c0_165] : memref<8x8xf32, #tpu.memory_space<vmem>>, vector<8x8xf32>
    %c24_166 = arith.constant 24 : index
    %c128_167 = arith.constant 128 : index
    %189 = vector.load %arg11[%c24_166, %c128_167] : memref<32x640xf32, #tpu.memory_space<vmem>>, vector<8x384xf32>
    %cst_168 = arith.constant dense<0.000000e+00> : vector<8x384xf32>
    %190 = tpu.matmul %188, %189, %cst_168 {dimension_numbers = #tpu.dot_dimension_numbers<[1], [0], [0], [1], [0, 0, 1, 1], [], []>} : vector<8x8xf32>, vector<8x384xf32>, vector<8x384xf32> -> vector<8x384xf32>
    %c0_169 = arith.constant 0 : index
    %c0_170 = arith.constant 0 : index
    %191 = vector.load %arg9[%c0_169, %c0_170] : memref<8x1xf32, #tpu.memory_space<vmem>>, vector<8x1xf32>
    %192 = vector.broadcast %191 : vector<8x1xf32> to vector<8x384xf32>
    %193 = arith.addf %190, %192 : vector<8x384xf32>
    %c0_171 = arith.constant 0 : index
    %c0_172 = arith.constant 0 : index
    %c0_173 = arith.constant 0 : index
    %194 = vector.load %arg10[%c0_171, %c0_172, %c0_173] : memref<1x8x384xf32, #tpu.memory_space<vmem>>, vector<1x8x384xf32>
    %195 = vector.shape_cast %194 : vector<1x8x384xf32> to vector<8x384xf32>
    %196 = vector.shape_cast %193 : vector<8x384xf32> to vector<1x8x384xf32>
    tpu.vector_store %arg10[%c0_171, %c0_172, %c0_173], %196 {strides = array<i32>} : memref<1x8x384xf32, #tpu.memory_space<vmem>>, vector<1x8x384xf32>,
    return
  }
  func.func @transform_0(%arg0: i32) -> (i32, i32, i32) {
    %c0_i32 = arith.constant 0 : i32
    %c0_i32_0 = arith.constant 0 : i32
    %c0_i32_1 = arith.constant 0 : i32
    return %arg0, %c0_i32, %c0_i32_0 : i32, i32, i32
  }
  func.func @transform_1(%arg0: i32) -> (i32, i32) {
    %c0_i32 = arith.constant 0 : i32
    %c0_i32_0 = arith.constant 0 : i32
    %c0_i32_1 = arith.constant 0 : i32
    return %c0_i32, %c0_i32_0 : i32, i32
  }
  func.func @transform_2(%arg0: i32) -> (i32, i32) {
    %c0_i32 = arith.constant 0 : i32
    %c0_i32_0 = arith.constant 0 : i32
    %c0_i32_1 = arith.constant 0 : i32
    return %c0_i32, %c0_i32_0 : i32, i32
  }
  func.func @transform_3(%arg0: i32) -> (i32, i32) {
    %c0_i32 = arith.constant 0 : i32
    %c0_i32_0 = arith.constant 0 : i32
    %c0_i32_1 = arith.constant 0 : i32
    return %c0_i32, %c0_i32_0 : i32, i32
  }
  func.func @transform_4(%arg0: i32) -> (i32, i32) {
    %c0_i32 = arith.constant 0 : i32
    %c0_i32_0 = arith.constant 0 : i32
    %c0_i32_1 = arith.constant 0 : i32
    return %c0_i32, %c0_i32_0 : i32, i32
  }
  func.func @transform_5(%arg0: i32) -> (i32, i32) {
    %c0_i32 = arith.constant 0 : i32
    %c0_i32_0 = arith.constant 0 : i32
    %c0_i32_1 = arith.constant 0 : i32
    return %c0_i32, %c0_i32_0 : i32, i32
  }
  func.func @transform_6(%arg0: i32) -> (i32, i32) {
    %c0_i32 = arith.constant 0 : i32
    %c0_i32_0 = arith.constant 0 : i32
    %c0_i32_1 = arith.constant 0 : i32
    return %c0_i32, %c0_i32_0 : i32, i32
  }
  func.func @transform_7(%arg0: i32) -> (i32, i32) {
    %c0_i32 = arith.constant 0 : i32
    %c0_i32_0 = arith.constant 0 : i32
    %c0_i32_1 = arith.constant 0 : i32
    return %c0_i32, %c0_i32_0 : i32, i32
  }
  func.func @transform_8(%arg0: i32) -> (i32, i32) {
    %c0_i32 = arith.constant 0 : i32
    %c0_i32_0 = arith.constant 0 : i32
    %c0_i32_1 = arith.constant 0 : i32
    return %c0_i32, %c0_i32_0 : i32, i32
  }
  func.func @transform_9(%arg0: i32) -> (i32, i32, i32) {
    %c0_i32 = arith.constant 0 : i32
    %c0_i32_0 = arith.constant 0 : i32
    %c0_i32_1 = arith.constant 0 : i32
    return %arg0, %c0_i32, %c0_i32_0 : i32, i32, i32
  }
}

</mosaic_0001>

<bundles_post_ra>
// kernel: dense_block_forward.1
= control target key start
LH: loop header
LB: loop body
LE: loop exit
PB: predicated region body
PF: predicated region fallthrough
CT: control target
= control target key end

     0   :  { %s2458_s30 = smov 0   ;;  %s3199_s0 = inlined_call_operand.vmem [shape: f32[2,8,384], index: 0, kind: input, shape index: {}]   ;;  %s3200_s1 = inlined_call_operand.vmem [shape: f32[5,384], index: 1, kind: input, shape index: {}]   ;;  %s3201_s2 = inlined_call_operand.vmem [shape: f32[8,8], index: 2, kind: input, shape index: {}]   ;;  %s3202_s3 = inlined_call_operand.vmem [shape: f32[8,1], index: 3, kind: input, shape index: {}]   ;;  %s3203_s4 = inlined_call_operand.vmem [shape: f32[8,72], index: 4, kind: input, shape index: {}]   ;;  %s3204_s5 = inlined_call_operand.vmem [shape: f32[8,144], index: 5, kind: input, shape index: {}]   ;;  %s3205_s6 = inlined_call_operand.vmem [shape: f32[8,216], index: 6, kind: input, shape index: {}]   ;;  %s3206_s7 = inlined_call_operand.vmem [shape: f32[8,8], index: 7, kind: input, shape index: {}]   ;;  %s3207_s8 = inlined_call_operand.vmem [shape: f32[8,1], index: 8, kind: input, shape index: {}]   ;;  %s3208_s9 = inlined_call_operand.vmem [shape: f32[2,8,384], index: 9, kind: output, shape index: {}]  }
   0x1 LB: > { %s2017_s10 = sadd.s32 4294967295, %s2392_s30   ;;  %p2021_p0 = scmp.ge.s32.totalorder %s2392_s30, 1  ;;  %s2392_s30 = sphi %s2458_s30, %s19_s30  }
   0x2   : > { %p287_p1 = scmp.lt.s32.totalorder %s2392_s30, 3 }
   0x4   : > { %p288_p2 = pnand %p2021_p0, %p287_p1 }
   0x6   : > { %291 = sbr.rel (%p288_p2) target bundleno = 2158 (0x86e), region = 56 }
   0xb   : > { %p323_p3 = scmp.lt.s32.totalorder %s2017_s10, 1  ;;  %v393_v0 = vld [vmem:[%s3202_s3] sm:$0xff]  ;;  %v2394_v1 = vmov 0   ;;  %vm3209_vm0 = vcmask 64512   ;;  %s2395_s19 = smov 127   ;;  %v3218_v12 = vmov 0.0  }
   0xc   : > { %2068 = vset.pattern.permute.xlu0 %v2394_v1  ;;  %2379 = vset.pattern.permute.xlu2 %v2394_v1  ;;  %v389_v2 = vld [vmem:[%s3201_s2] sm:$0xff]  ;;  %s2396_s20 = smov 110   ;;  %s2397_s21 = smov 109   ;;  %vm3215_vm1 = vcmask 891904   ;;  %vm3212_vm2 = vcmask 900096   ;;  %vm3226_vm3 = vcmask 908288  }
   0xd   : > { %s3363_s10 = smov (!%p323_p3, %s2017_s10), 1  ;;  %396 = vperm.xlu0 %2068, %v393_v0   ;;  %s2399_s22 = smov 18   ;;  %vm3225_vm4 = vcmask 1039360   ;;  %vm3217_vm5 = vcmask 7168   ;;  %vm3216_vm6 = vcmask 138240   ;;  %vm3214_vm7 = vcmask 146432  }
   0xe   : > { %s2045_s13 = smul.u32 24, %s3363_s10  ;;  %s2400_s23 = smov 111   ;;  %vm3213_vm8 = vcmask 154624   ;;  %vm708_vm9 = vcmask 588800   ;;  %vm3211_vm15 = vcmask 15360  }
   0xf   : > { %s2401_s24 = smov 17   ;;  %s2402_s25 = smov 1  }
  0x10   : > { %s327_s16 = scalar_lea.vmem %s3199_s0, %s2045_s13  ;;  %s2403_s26 = smov 19  }
  0x11   : > { %v390_v3 = vld [vmem:[%s327_s16] sm:$0xff]  ;;  %v391_v4 = vld [vmem:[%s327_s16 + $0x8] sm:$0xff]  ;;  %v392_v5 = vld [vmem:[%s327_s16 + $0x10] sm:$0xff]  ;;  %s2404_s12 = smov 2   ;;  %s2405_s14 = smov 126  }
  0x12   : > { %418 = vmatpush.msra.mxu0 %v390_v3  ;;  %438 = vmatpush.msra.mxu1 %v391_v4  ;;  %s2406_s27 = smov 36   ;;  %s2407_s28 = smov 92  }
  0x13   : > { %458 = vmatpush.msra.mxu2 %v392_v5  ;;  %2028 = vmatmul.msk.f32.vlgmr.msra.gmra.mxu0 %vm3209_vm0, %v389_v2 }
  0x14   : > { %2029 = vmatmul.msk.f32.vlgmr.msra.gmra.mxu1 %vm3209_vm0, %v389_v2  ;;  %2030 = vmatmul.msk.f32.vlgmr.msra.gmra.mxu2 %vm3209_vm0, %v389_v2 }
  0x7f   : > { %v397_v6 = vpop.permute.xlu0 %396 }
  0x90   : > { %v420_v7 = vpop.f32.mrf.mxu0 }
  0x91   : > { %v2485_v8 = vadd.f32 %v420_v7, %v397_v6  ;;  %v440_v9 = vpop.f32.mrf.mxu1  ;;  %v680_v7 = vld [vmem:[%s3203_s4] sm:$0xff] }
  0x92   : > { %v2487_v10 = vadd.f32 %v440_v9, %v397_v6 }
  0x93   : > { %v2099_v13 = vpack.i.bf16 %v2485_v8, %v3218_v12 }
  0x94   : > { %v2084_v11 = vpack.i.bf16 %v2487_v10, %v2485_v8 }
  0x96   : > { %2085 = vrot.lane.b32.xlu2 %v2084_v11, %s2395_s19  ;;  %2075 = vrot.lane.b32.xlu1 %v2084_v11, %s2396_s20 }
  0x97   : > { %2070 = vrot.lane.b32.xlu0 %v2084_v11, %s2397_s21  ;;  %v460_v14 = vpop.f32.mrf.mxu2 }
  0x98   : > { %v2499_v15 = vadd.f32 %v460_v14, %v397_v6 }
  0x9a   : > { %v2104_v16 = vpack.i.bf16 0.0, %v2499_v15  ;;  %v2134_v17 = vpack.i.bf16 %v2499_v15, %v2487_v10 }
  0x9e   : > { %2100 = vrot.lane.b32.xlu2 %v2099_v13, %s2399_s22  ;;  %2080 = vrot.lane.b32.xlu1 %v2084_v11, %s2400_s23 }
  0x9f   : > { %2095 = vrot.lane.b32.xlu0 %v2099_v13, %s2401_s24 }
  0xa6   : > { %2105 = vrot.lane.b32.xlu2 %v2104_v16, %s2397_s21  ;;  %2090 = vrot.lane.b32.xlu1 %v2099_v13, %s2402_s25 }
  0xa7   : > { %2110 = vrot.lane.b32.xlu0 %v2104_v16, %s2396_s20 }
  0xae   : > { %2120 = vrot.lane.b32.xlu2 %v2104_v16, %s2400_s23  ;;  %2125 = vrot.lane.b32.xlu1 %v2104_v16, %s2395_s19 }
  0xaf   : > { %2115 = vrot.lane.b32.xlu0 %v2099_v13, %s2403_s26 }
  0xb6   : > { %2135 = vrot.lane.b32.xlu2 %v2134_v17, %s2401_s24  ;;  %2130 = vrot.lane.b32.xlu1 %v2134_v17, %s2402_s25 }
  0xb7   : > { %2140 = vrot.lane.b32.xlu0 %v2134_v17, %s2399_s22 }
  0xbe   : > { %2145 = vrot.lane.b32.xlu1 %v2134_v17, %s2403_s26 }
  0xf0   : > { %v2514_v18 = vpop.permute.xlu2 %2085 }
  0xf1   : > { %v2088_v34 = vunpack.i.h.bf16 %v2514_v18  ;;  %v2087_v35 = vunpack.i.l.bf16 %v2514_v18 }
  0xf3   : > { %v2543_v40 = vsel %vm3225_vm4, %v2087_v35, %v2088_v34 }
  0xf8   : > { %v2516_v19 = vpop.permute.xlu2 %2100 }
  0xf9   : > { %v2103_v52 = vunpack.i.h.bf16 %v2516_v19  ;;  %v2102_v53 = vunpack.i.l.bf16 %v2516_v19 }
  0xfb   : > { %v2576_v60 = vsel %vm3214_vm7, %v2102_v53, %v2103_v52 }
 0x100   : > { %v2106_v20 = vpop.permute.xlu2 %2105 }
 0x101   : > { %v2108_v21 = vunpack.i.h.bf16 %v2106_v20  ;;  %v2107_v22 = vunpack.i.l.bf16 %v2106_v20 }
 0x103   : > { %v2519_v23 = vsel %vm3215_vm1, %v2107_v22, %v2108_v21 }
 0x104   : > { %759 = vmatpush.msrb.mxu1 %v2519_v23 }
 0x108   : > { %v2076_v24 = vpop.permute.xlu1 %2075  ;;  %v2121_v41 = vpop.permute.xlu2 %2120 }
 0x109   : > { %v2071_v25 = vpop.permute.xlu0 %2070  ;;  %v2078_v26 = vunpack.i.h.bf16 %v2076_v24  ;;  %v2077_v27 = vunpack.i.l.bf16 %v2076_v24  ;;  %v2123_v48 = vunpack.i.h.bf16 %v2121_v41  ;;  %v2122_v49 = vunpack.i.l.bf16 %v2121_v41 }
 0x10a   : > { %v2073_v28 = vunpack.i.h.bf16 %v2071_v25  ;;  %v2072_v29 = vunpack.i.l.bf16 %v2071_v25 }
 0x10b   : > { %v2531_v32 = vsel %vm3212_vm2, %v2077_v27, %v2078_v26  ;;  %v2571_v59 = vsel %vm3226_vm3, %v2122_v49, %v2123_v48 }
 0x10c   : > { %v2523_v30 = vsel %vm3215_vm1, %v2072_v29, %v2073_v28  ;;  %v2526_v31 = vsel %vm3215_vm1, %v2073_v28, %v2107_v22 }
 0x10d   : > { %719 = vmatpush.msra.mxu3 %v2523_v30  ;;  %739 = vmatpush.msrb.mxu0 %v2526_v31 }
 0x10f   : > { %720 = vmatpush.msra.mxu3 %v2531_v32 }
 0x110   : > { %v2081_v33 = vpop.permute.xlu1 %2080  ;;  %v2136_v9 = vpop.permute.xlu2 %2135 }
 0x111   : > { %v2083_v36 = vunpack.i.h.bf16 %v2081_v33  ;;  %v2082_v37 = vunpack.i.l.bf16 %v2081_v33  ;;  %v2536_v38 = vpop.permute.xlu0 %2095  ;;  %v2138_v13 = vunpack.i.h.bf16 %v2136_v9  ;;  %v2137_v14 = vunpack.i.l.bf16 %v2136_v9 }
 0x112   : > { %v2098_v43 = vunpack.i.h.bf16 %v2536_v38  ;;  %v2097_v44 = vunpack.i.l.bf16 %v2536_v38 }
 0x113   : > { %v2539_v39 = vsel %vm3226_vm3, %v2082_v37, %v2083_v36  ;;  %v2568_v58 = vsel %vm3226_vm3, %v2083_v36, %v2122_v49  ;;  %v2609_v25 = vsel %vm3216_vm6, %v2137_v14, %v2138_v13  ;;  %v341_v36 = vld [vmem:[%s3200_s1] ss:$8 sm:$0x7] }
 0x114   : > { %721 = vmatpush.msra.mxu3 %v2539_v39  ;;  %v2564_v57 = vsel %vm3216_vm6, %v2097_v44, %v2098_v43  ;;  %v2606_v24 = vsel %vm3216_vm6, %v2098_v43, %v2137_v14  ;;  %v2634_v37 = vperm.slane %v341_v36, 0  ;;  %v2636_v41 = vperm.slane %v341_v36, 1 }
 0x116   : > { %722 = vmatpush.msra.mxu3 %v2543_v40 }
 0x118   : > { %v2091_v42 = vpop.permute.xlu1 %2090  ;;  %723 = vmatpush.msra.mxu3 %v2485_v8 }
 0x119   : > { %v2093_v45 = vunpack.i.h.bf16 %v2091_v42  ;;  %v2092_v46 = vunpack.i.l.bf16 %v2091_v42  ;;  %v2111_v47 = vpop.permute.xlu0 %2110  ;;  %v2638_v42 = vperm.slane %v341_v36, 2 }
 0x11a   : > { %v2113_v50 = vunpack.i.h.bf16 %v2111_v47  ;;  %v2112_v51 = vunpack.i.l.bf16 %v2111_v47 }
 0x11b   : > { %v2552_v54 = vsel %vm3217_vm5, %v2092_v46, %v2093_v45 }
 0x11c   : > { %724 = vmatpush.msra.mxu3 %v2552_v54  ;;  %v2556_v55 = vsel %vm3212_vm2, %v2078_v26, %v2112_v51  ;;  %v2559_v56 = vsel %vm3212_vm2, %v2112_v51, %v2113_v50  ;;  %vm3223_vm2 = vcmask 293888  }
 0x11d   : > { %740 = vmatpush.msrb.mxu0 %v2556_v55  ;;  %760 = vmatpush.msrb.mxu1 %v2559_v56 }
 0x11e   : > { %725 = vmatpush.msra.mxu3 %v2564_v57 }
 0x11f   : > { %741 = vmatpush.msrb.mxu0 %v2568_v58  ;;  %761 = vmatpush.msrb.mxu1 %v2571_v59 }
 0x120   : > { %v2126_v61 = vpop.permute.xlu1 %2125  ;;  %726 = vmatpush.msra.mxu3 %v2576_v60 }
 0x121   : > { %v2128_v62 = vunpack.i.h.bf16 %v2126_v61  ;;  %v2127_v63 = vunpack.i.l.bf16 %v2126_v61  ;;  %v2116_v0 = vpop.permute.xlu0 %2115 }
 0x122   : > { %v2118_v2 = vunpack.i.h.bf16 %v2116_v0  ;;  %v2117_v3 = vunpack.i.l.bf16 %v2116_v0 }
 0x123   : > { %v2580_v4 = vsel %vm3225_vm4, %v2088_v34, %v2127_v63  ;;  %v2583_v5 = vsel %vm3225_vm4, %v2127_v63, %v2128_v62 }
 0x124   : > { %v2586_v6 = vsel %vm3213_vm8, %v2117_v3, %v2118_v2  ;;  %742 = vmatpush.msrb.mxu0 %v2580_v4  ;;  %762 = vmatpush.msrb.mxu1 %v2583_v5 }
 0x125   : > { %727 = vmatpush.msra.mxu3 %v2586_v6 }
 0x126   : > { %743 = vmatpush.msrb.mxu0 %v2487_v10  ;;  %763 = vmatpush.msrb.mxu1 %v2499_v15 }
 0x127   : > { %2031 = vmatmul.msk.f32.vlgmr.msra.gmra.mxu3 %vm708_vm9, %v680_v7 }
 0x128   : > { %v2131_v11 = vpop.permute.xlu1 %2130 }
 0x129   : > { %v2133_v16 = vunpack.i.h.bf16 %v2131_v11  ;;  %v2132_v17 = vunpack.i.l.bf16 %v2131_v11  ;;  %v2141_v18 = vpop.permute.xlu0 %2140 }
 0x12a   : > { %v2143_v19 = vunpack.i.h.bf16 %v2141_v18  ;;  %v2142_v20 = vunpack.i.l.bf16 %v2141_v18 }
 0x12b   : > { %v2598_v21 = vsel %vm3217_vm5, %v2093_v45, %v2132_v17  ;;  %v2601_v22 = vsel %vm3217_vm5, %v2132_v17, %v2133_v16 }
 0x12c   : > { %744 = vmatpush.msrb.mxu0 %v2598_v21  ;;  %764 = vmatpush.msrb.mxu1 %v2601_v22  ;;  %v2614_v26 = vsel %vm3214_vm7, %v2103_v52, %v2142_v20  ;;  %v2617_v27 = vsel %vm3214_vm7, %v2142_v20, %v2143_v19  ;;  %vm3221_vm7 = vcmask 752640  }
 0x12e   : > { %745 = vmatpush.msrb.mxu0 %v2606_v24  ;;  %765 = vmatpush.msrb.mxu1 %v2609_v25 }
 0x130   : > { %v2146_v28 = vpop.permute.xlu1 %2145  ;;  %746 = vmatpush.msrb.mxu0 %v2614_v26  ;;  %766 = vmatpush.msrb.mxu1 %v2617_v27 }
 0x131   : > { %v2148_v29 = vunpack.i.h.bf16 %v2146_v28  ;;  %v2147_v33 = vunpack.i.l.bf16 %v2146_v28 }
 0x133   : > { %v2622_v34 = vsel %vm3213_vm8, %v2118_v2, %v2147_v33  ;;  %v2625_v35 = vsel %vm3213_vm8, %v2147_v33, %v2148_v29 }
 0x134   : > { %747 = vmatpush.msrb.mxu0 %v2622_v34  ;;  %767 = vmatpush.msrb.mxu1 %v2625_v35 }
 0x135   : > { %2032 = vmatmul.msk.f32.vlgmr.msrb.gmra.mxu0 %vm708_vm9, %v680_v7  ;;  %2033 = vmatmul.msk.f32.vlgmr.msrb.gmra.mxu1 %vm708_vm9, %v680_v7  ;;  %vm3210_vm9 = vcmask 1031168  }
 0x1aa   : > { %v729_v38 = vpop.f32.mrf.mxu3 }
 0x1ab   : > { %v772_v43 = vmul.f32 %v729_v38, %v2634_v37 }
 0x1ad   : > { %v780_v48 = vmul.f32 %v772_v43, %v729_v38 }
 0x1b2   : > { %v749_v44 = vpop.f32.mrf.mxu0  ;;  %v769_v45 = vpop.f32.mrf.mxu1 }
 0x1b3   : > { %v773_v46 = vmul.f32 %v749_v44, %v2636_v41  ;;  %v774_v47 = vmul.f32 %v769_v45, %v2638_v42 }
 0x1b5   : > { %v781_v49 = vmul.f32 %v773_v46, %v749_v44  ;;  %v775_v50 = vadd.f32 %v773_v46, %v772_v43  ;;  %v782_v52 = vmul.f32 %v774_v47, %v769_v45 }
 0x1b7   : > { %v776_v51 = vadd.f32 %v775_v50, %v774_v47  ;;  %v783_v53 = vadd.f32 %v781_v49, %v780_v48 }
 0x1b9   : > { %777 = vadd.xlane.f32.xlu2 %v776_v51  ;;  %v784_v61 = vadd.f32 %v783_v53, %v782_v52  ;;  %v2024_v52 = vld [vmem:[%s3200_s1 + $0x1] ss:$8 sm:$0x7] }
 0x1ba   : > { %vm351_vm14 = vcmp.ne.f32.partialorder %v2024_v52, 0.0 }
 0x1bb   : > { %785 = vadd.xlane.f32.xlu0 %v784_v61 }
 0x22c   : > { %v778_v62 = vpop.xlane.xlu2 %777 }
 0x22d   : > { %v779_v63 = vmul.f32 0.00390625, %v778_v62  ;;  %v352_v62 = vsel %vm351_vm14, 1, %v2394_v1 }
 0x22e   : > { %v786_v0 = vpop.xlane.xlu0 %785 }
 0x22f   : > { %v787_v2 = vmul.f32 0.00390625, %v786_v0  ;;  %v788_v3 = vmul.f32 %v779_v63, %v779_v63  ;;  %v790_v19 = vsub.f32 %v729_v38, %v779_v63  ;;  %v791_v29 = vsub.f32 %v749_v44, %v779_v63 }
 0x230   : > { %v792_v33 = vsub.f32 %v769_v45, %v779_v63  ;;  %v2025_v45 = vld [vmem:[%s3200_s1 + $0x2] ss:$8 sm:$0x7] }
 0x231   : > { %v789_v7 = vsub.f32 %v787_v2, %v788_v3  ;;  %vm361_vm13 = vcmp.ne.f32.partialorder %v2025_v45, 0.0  ;;  %v353_v3 = vperm.slane %v352_v62, 0 }
 0x232   : > { %v362_v61 = vsel %vm361_vm13, 1, %v2394_v1 }
 0x233   : > { %v793_v9 = vadd.f32 1e-05, %v789_v7  ;;  %v363_v2 = vperm.slane %v362_v61, 0 }
 0x235   : > { %2380 = vrsqrt.f32 %v793_v9  ;;  %vm800_vm11 = vweird.f32 %v793_v9 }
 0x23b   : > { %v2381_v11 = vpop.eup %2380 }
 0x23c   : > { %v795_v13 = vmul.f32 %v2381_v11, %v793_v9  ;;  %vm801_vm10 = vweird.f32 %v2381_v11 }
 0x23d   : > { %vm802_vm12 = vmor %vm800_vm11, %vm801_vm10  ;;  %vm2657_vm10 = vcmp.eq.s32.totalorder %v363_v2, 1  ;;  %vm2661_vm11 = vcmp.eq.s32.totalorder %v353_v3, 1 }
 0x23e   : > { %v796_v14 = vmul.f32 %v2381_v11, %v795_v13 }
 0x240   : > { %v797_v16 = vmul.f32 0.5, %v796_v14 }
 0x242   : > { %v798_v17 = vsub.f32 1.5, %v797_v16  ;;  %v3246_v16 = vmov 0 }
 0x243   : > { %v3247_v16 = vsel %vm2661_vm11, 4294967295, %v3246_v16 }
 0x244   : > { %v799_v18 = vmul.f32 %v2381_v11, %v798_v17  ;;  %3248 = vst [vmem:[#allocation4_spill] sm:$0xff] %v3247_v16 }
 0x246   : > { %v803_v20 = vsel %vm802_vm12, %v2381_v11, %v799_v18 }
 0x247   : > { %v804_v28 = vmul.f32 %v803_v20, %v790_v19  ;;  %v805_v46 = vmul.f32 %v803_v20, %v791_v29  ;;  %v806_v47 = vmul.f32 %v803_v20, %v792_v33  ;;  %v365_v19 = vperm.slane %v362_v61, 2 }
 0x248   : > { %v364_v33 = vperm.slane %v362_v61, 1  ;;  %v3258_v61 = vmov 0 }
 0x249   : > { %v807_v36 = vmax.f32 %v804_v28, 0.0  ;;  %v808_v48 = vmax.f32 %v805_v46, 0.0  ;;  %v809_v49 = vmax.f32 %v806_v47, 0.0  ;;  %v355_v46 = vperm.slane %v352_v62, 2 }
 0x24a   : > { %v354_v47 = vperm.slane %v352_v62, 1  ;;  %vm2677_vm12 = vcmp.eq.s32.totalorder %v365_v19, 1  ;;  %vm2681_vm13 = vcmp.eq.s32.totalorder %v364_v33, 1 }
 0x24b   : > { %v2149_v43 = vpack.i.bf16 %v807_v36, %v3218_v12  ;;  %v2154_v50 = vpack.i.bf16 %v809_v49, %v808_v48  ;;  %v2159_v51 = vpack.i.bf16 %v808_v48, %v807_v36  ;;  %v2164_v38 = vpack.i.bf16 0.0, %v809_v49 }
 0x24c   : > { %vm2685_vm14 = vcmp.eq.s32.totalorder %v355_v46, 1  ;;  %vm2689_vm0 = vcmp.eq.s32.totalorder %v354_v47, 1 }
 0x24d   : > { %2150 = vrot.lane.b32.xlu1 %v2149_v43, %s2404_s12  ;;  %v3259_v61 = vsel %vm2689_vm0, 4294967295, %v3258_v61 }
 0x24e   : > { %3260 = vst [vmem:[#allocation8_spill] sm:$0xff] %v3259_v61 }
 0x255   : > { %2155 = vrot.lane.b32.xlu1 %v2154_v50, %s2404_s12 }
 0x25d   : > { %2160 = vrot.lane.b32.xlu1 %v2159_v51, %s2405_s14 }
 0x265   : > { %2165 = vrot.lane.b32.xlu1 %v2164_v38, %s2405_s14  ;;  %v3249_v38 = vmov 0 }
 0x266   : > { %v3250_v38 = vsel %vm2677_vm12, 4294967295, %v3249_v38 }
 0x267   : > { %3251 = vst [vmem:[#allocation5_spill] sm:$0xff] %v3250_v38 }
 0x2bf   : > { %v2151_v44 = vpop.permute.xlu1 %2150 }
 0x2c0   : > { %v2153_v63 = vunpack.i.h.bf16 %v2151_v44  ;;  %v2152_v0 = vunpack.i.l.bf16 %v2151_v44  ;;  %v3252_v44 = vmov 0 }
 0x2c1   : > { %v3253_v44 = vsel %vm2681_vm13, 4294967295, %v3252_v44 }
 0x2c2   : > { %v831_v7 = vsel %vm3211_vm15, %v2152_v0, %v2153_v63  ;;  %3254 = vst [vmem:[#allocation6_spill] sm:$0xff] %v3253_v44 }
 0x2c3   : > { %v837_v18 = vsel %vm2657_vm10, %v831_v7, %v807_v36 }
 0x2c7   : > { %v2156_v53 = vpop.permute.xlu1 %2155 }
 0x2c8   : > { %v2158_v20 = vunpack.i.h.bf16 %v2156_v53  ;;  %v2157_v28 = vunpack.i.l.bf16 %v2156_v53  ;;  %v3255_v53 = vmov 0 }
 0x2c9   : > { %v3256_v53 = vsel %vm2685_vm14, 4294967295, %v3255_v53 }
 0x2ca   : > { %v832_v50 = vsel %vm3211_vm15, %v2153_v63, %v2157_v28  ;;  %v833_v36 = vsel %vm3211_vm15, %v2157_v28, %v2158_v20  ;;  %3257 = vst [vmem:[#allocation7_spill] sm:$0xff] %v3256_v53 }
 0x2cb   : > { %v839_v0 = vsel %vm2677_vm12, %v833_v36, %v809_v49  ;;  %v838_v2 = vsel %vm2681_vm13, %v832_v50, %v808_v48  ;;  %v2027_v48 = vld [vmem:[%s3200_s1 + $0x4] ss:$8 sm:$0x7]  ;;  %v2026_v49 = vld [vmem:[%s3200_s1 + $0x3] ss:$8 sm:$0x7] }
 0x2cc   : > { %vm371_vm15 = vcmp.ne.f32.partialorder %v2026_v49, 0.0 }
 0x2cd   : > { %v372_v20 = vsel %vm371_vm15, 1, %v2394_v1 }
 0x2cf   : > { %v2161_v9 = vpop.permute.xlu1 %2160 }
 0x2d0   : > { %v2163_v13 = vunpack.i.h.bf16 %v2161_v9  ;;  %v2162_v14 = vunpack.i.l.bf16 %v2161_v9 }
 0x2d2   : > { %v850_v17 = vsel %vm3210_vm9, %v2162_v14, %v2163_v13 }
 0x2d3   : > { %v2670_v29 = vsel %vm2661_vm11, %v850_v17, %v837_v18 }
 0x2d4   : > { %v2169_v43 = vpack.i.bf16 %v2670_v29, %v3218_v12 }
 0x2d6   : > { %2170 = vrot.lane.b32.xlu1 %v2169_v43, %s2406_s27 }
 0x2d7   : > { %v2166_v51 = vpop.permute.xlu1 %2165 }
 0x2d8   : > { %v2168_v45 = vunpack.i.h.bf16 %v2166_v51  ;;  %v2167_v52 = vunpack.i.l.bf16 %v2166_v51  ;;  %v375_v51 = vperm.slane %v372_v20, 2 }
 0x2da   : > { %v851_v62 = vsel %vm3210_vm9, %v2163_v13, %v2167_v52  ;;  %v852_v63 = vsel %vm3210_vm9, %v2167_v52, %v2168_v45  ;;  %vm381_vm9 = vcmp.ne.f32.partialorder %v2027_v48, 0.0  ;;  %v373_v45 = vperm.slane %v372_v20, 0 }
 0x2db   : > { %v858_v3 = vsel %vm2685_vm14, %v852_v63, %v839_v0  ;;  %v857_v7 = vsel %vm2689_vm0, %v851_v62, %v838_v2  ;;  %v382_v13 = vsel %vm381_vm9, 1, %v2394_v1  ;;  %v374_v52 = vperm.slane %v372_v20, 1 }
 0x2dc   : > { %v2184_v9 = vpack.i.bf16 0.0, %v858_v3  ;;  %v2174_v14 = vpack.i.bf16 %v858_v3, %v857_v7  ;;  %v2179_v17 = vpack.i.bf16 %v857_v7, %v2670_v29  ;;  %v385_v28 = vperm.slane %v382_v13, 2 }
 0x2dd   : > { %v383_v33 = vperm.slane %v382_v13, 0  ;;  %v384_v47 = vperm.slane %v382_v13, 1  ;;  %v3261_v62 = vmov 0  ;;  %v3264_v63 = vmov 0 }
 0x2de   : > { %2185 = vrot.lane.b32.xlu0 %v2184_v9, %s2407_s28  ;;  %2175 = vrot.lane.b32.xlu2 %v2174_v14, %s2406_s27  ;;  %vm2715_vm8 = vcmp.eq.s32.totalorder %v385_v28, 1  ;;  %v3267_v0 = vmov 0  ;;  %vm2730_vm1 = vcmp.eq.s32.totalorder %v375_v51, 1  ;;  %vm2734_vm6 = vcmp.eq.s32.totalorder %v373_v45, 1 }
 0x2df   : > { %2180 = vrot.lane.b32.xlu1 %v2179_v17, %s2407_s28  ;;  %v3262_v62 = vsel %vm2715_vm8, 4294967295, %v3261_v62  ;;  %vm2719_vm9 = vcmp.eq.s32.totalorder %v383_v33, 1  ;;  %vm2724_vm15 = vcmp.eq.s32.totalorder %v384_v47, 1  ;;  %v3270_v17 = vmov 0 }
 0x2e0   : > { %3263 = vst [vmem:[#allocation9_spill] sm:$0xff] %v3262_v62  ;;  %v3265_v63 = vsel %vm2719_vm9, 4294967295, %v3264_v63  ;;  %v3268_v0 = vsel %vm2724_vm15, 4294967295, %v3267_v0  ;;  %v3271_v17 = vsel %vm2730_vm1, 4294967295, %v3270_v17  ;;  %vm2738_vm5 = vcmp.eq.s32.totalorder %v374_v52, 1 }
 0x2e1   : > { %3266 = vst [vmem:[#allocation10_spill] sm:$0xff] %v3265_v63 }
 0x2e2   : > { %3269 = vst [vmem:[#allocation11_spill] sm:$0xff] %v3268_v0 }
 0x2e3   : > { %3272 = vst [vmem:[#allocation12_spill] sm:$0xff] %v3271_v17 }
 0x338   : > { %v2176_v19 = vpop.permute.xlu2 %2175 }
 0x339   : > { %v2178_v43 = vunpack.i.h.bf16 %v2176_v19  ;;  %v2177_v46 = vunpack.i.l.bf16 %v2176_v19  ;;  %v3276_v19 = vmov 0 }
 0x33a   : > { %v3277_v19 = vsel %vm2738_vm5, 4294967295, %v3276_v19 }
 0x33b   : > { %v882_v1 = vsel %vm3223_vm2, %v2177_v46, %v2178_v43  ;;  %3278 = vst [vmem:[#allocation14_spill] sm:$0xff] %v3277_v19 }
 0x33c   : > { %v888_v33 = vsel %vm2715_vm8, %v882_v1, %v858_v3 }
 0x348   : > { %v2171_v18 = vpop.permute.xlu1 %2170 }
 0x349   : > { %v2173_v50 = vunpack.i.h.bf16 %v2171_v18  ;;  %v2172_v36 = vunpack.i.l.bf16 %v2171_v18  ;;  %v3273_v18 = vmov 0 }
 0x34a   : > { %v3274_v18 = vsel %vm2734_vm6, 4294967295, %v3273_v18 }
 0x34b   : > { %v881_v2 = vsel %vm3223_vm2, %v2173_v50, %v2177_v46  ;;  %v880_v14 = vsel %vm3223_vm2, %v2172_v36, %v2173_v50  ;;  %3275 = vst [vmem:[#allocation13_spill] sm:$0xff] %v3274_v18 }
 0x34c   : > { %v887_v43 = vsel %vm2724_vm15, %v881_v2, %v857_v7  ;;  %v886_v47 = vsel %vm2719_vm9, %v880_v14, %v2670_v29 }
 0x350   : > { %v2186_v9 = vpop.permute.xlu0 %2185 }
 0x351   : > { %v2188_v48 = vunpack.i.h.bf16 %v2186_v9  ;;  %v2187_v49 = vunpack.i.l.bf16 %v2186_v9  ;;  %v2181_v13 = vpop.permute.xlu1 %2180 }
 0x352   : > { %v2183_v20 = vunpack.i.h.bf16 %v2181_v13  ;;  %v2182_v28 = vunpack.i.l.bf16 %v2181_v13 }
 0x353   : > { %v901_v46 = vsel %vm3221_vm7, %v2187_v49, %v2188_v48 }
 0x354   : > { %v2752_v50 = vsel %vm2730_vm1, %v901_v46, %v888_v33  ;;  %v900_v36 = vsel %vm3221_vm7, %v2183_v20, %v2187_v49  ;;  %v899_v51 = vsel %vm3221_vm7, %v2182_v28, %v2183_v20  ;;  %vm3279_vm7 = vcmask 7168  }
 0x355   : > { %v2758_v3 = vsel %vm2734_vm6, %v899_v51, %v886_v47  ;;  %v2762_v7 = vsel %vm2738_vm5, %v900_v36, %v887_v43  ;;  %v2204_v45 = vpack.i.bf16 0.0, %v2752_v50  ;;  %vm3280_vm2 = vmmov %vm3279_vm7 }
 0x356   : > { %v2189_v29 = vpack.i.bf16 %v2762_v7, %v2758_v3  ;;  %v2219_v52 = vpack.i.bf16 %v2752_v50, %v2762_v7  ;;  %v2214_v1 = vpack.i.bf16 %v2758_v3, %v3218_v12 }
 0x357   : > { %2205 = vrot.lane.b32.xlu0 %v2204_v45, %s2395_s19  ;;  %2200 = vrot.lane.b32.xlu2 %v2204_v45, %s2400_s23 }
 0x358   : > { %2190 = vrot.lane.b32.xlu1 %v2189_v29, %s2400_s23 }
 0x35f   : > { %2220 = vrot.lane.b32.xlu0 %v2219_v52, %s2402_s25  ;;  %2215 = vrot.lane.b32.xlu2 %v2214_v1, %s2401_s24 }
 0x360   : > { %2195 = vrot.lane.b32.xlu1 %v2189_v29, %s2395_s19 }
 0x367   : > { %2235 = vrot.lane.b32.xlu0 %v2214_v1, %s2403_s26  ;;  %2230 = vrot.lane.b32.xlu2 %v2219_v52, %s2401_s24 }
 0x368   : > { %2210 = vrot.lane.b32.xlu1 %v2214_v1, %s2402_s25 }
 0x36f   : > { %2250 = vrot.lane.b32.xlu0 %v2189_v29, %s2397_s21  ;;  %2245 = vrot.lane.b32.xlu2 %v2219_v52, %s2403_s26 }
 0x370   : > { %2225 = vrot.lane.b32.xlu1 %v2214_v1, %s2399_s22 }
 0x377   : > { %1079 = vrot.lane.b32.xlu0 %v2752_v50, %s2396_s20  ;;  %1104 = vrot.lane.b32.xlu2 %v2752_v50, %s2397_s21 }
 0x378   : > { %2240 = vrot.lane.b32.xlu1 %v2219_v52, %s2399_s22 }
 0x37f   : > { %1081 = vrot.lane.b32.xlu2 %v3218_v12, %s2396_s20 }
 0x380   : > { %2255 = vrot.lane.b32.xlu1 %v2189_v29, %s2396_s20 }
 0x388   : > { %1106 = vrot.lane.b32.xlu1 %v3218_v12, %s2397_s21 }
 0x3b1   : > { %v2793_v2 = vpop.permute.xlu2 %2200 }
 0x3b2   : > { %v3222_v49 = vunpack.i.l.bf16 %v2793_v2  ;;  %v3295_v38 = vunpack.i.l.bf16 %v2793_v2 }
 0x3b9   : > { %v2216_v9 = vpop.permute.xlu2 %2215 }
 0x3c1   : > { %v2808_v43 = vpop.permute.xlu2 %2230 }
 0x3c9   : > { %v2795_v14 = vpop.permute.xlu0 %2205  ;;  %v2825_v1 = vpop.permute.xlu2 %2245 }
 0x3ca   : > { %v2191_v48 = vpop.permute.xlu1 %2190  ;;  %v3220_v36 = vunpack.i.l.bf16 %v2795_v14 }
 0x3cb   : > { %v2193_v13 = vunpack.i.h.bf16 %v2191_v48  ;;  %v2192_v20 = vunpack.i.l.bf16 %v2191_v48 }
 0x3cd   : > { %v2799_v28 = vsel %vm3226_vm3, %v2192_v20, %v2193_v13  ;;  %v2804_v33 = vsel %vm3226_vm3, %v2193_v13, %v3222_v49  ;;  %v2218_v13 = vunpack.i.h.bf16 %v2216_v9  ;;  %v2217_v20 = vunpack.i.l.bf16 %v2216_v9 }
 0x3ce   : > { %1177 = vmatpush.msrb.mxu2 %v2799_v28  ;;  %1217 = vmatpush.msra.mxu0 %v2804_v33 }
 0x3d1   : > { %v2810_v46 = vpop.permute.xlu0 %2220  ;;  %v1105_v19 = vpop.permute.xlu2 %1104 }
 0x3d2   : > { %v2196_v47 = vpop.permute.xlu1 %2195  ;;  %v3228_v12 = vunpack.i.l.bf16 %v2810_v46 }
 0x3d3   : > { %v2198_v51 = vunpack.i.h.bf16 %v2196_v47  ;;  %v2197_v45 = vunpack.i.l.bf16 %v2196_v47 }
 0x3d5   : > { %v2814_v29 = vsel %vm3225_vm4, %v2197_v45, %v2198_v51  ;;  %v2819_v52 = vsel %vm3225_vm4, %v2198_v51, %v3220_v36  ;;  %v3235_v45 = vunpack.i.l.bf16 %v2808_v43  ;;  %vm3281_vm4 = vcmask 138240  }
 0x3d6   : > { %1178 = vmatpush.msrb.mxu2 %v2814_v29  ;;  %1218 = vmatpush.msra.mxu0 %v2819_v52  ;;  %v2840_v9 = vsel %vm3281_vm4, %v2217_v20, %v2218_v13  ;;  %vm3282_vm3 = vmmov %vm3281_vm4 }
 0x3d7   : > { %v2845_v62 = vsel %vm3282_vm3, %v2218_v13, %v3235_v45  ;;  %vm3287_vm3 = vcmask 146432  }
 0x3d8   : > { %1179 = vmatpush.msrb.mxu2 %v2758_v3  ;;  %1219 = vmatpush.msra.mxu0 %v2762_v7 }
 0x3d9   : > { %v2236_v48 = vpop.permute.xlu0 %2235 }
 0x3da   : > { %v2211_v47 = vpop.permute.xlu1 %2210  ;;  %v2238_v18 = vunpack.i.h.bf16 %v2236_v48  ;;  %v2237_v0 = vunpack.i.l.bf16 %v2236_v48 }
 0x3db   : > { %v2213_v51 = vunpack.i.h.bf16 %v2211_v47  ;;  %v2212_v36 = vunpack.i.l.bf16 %v2211_v47 }
 0x3dd   : > { %v2830_v49 = vsel %vm3279_vm7, %v2212_v36, %v2213_v51  ;;  %v2835_v17 = vsel %vm3280_vm2, %v2213_v51, %v3228_v12  ;;  %vm3283_vm2 = vcmask 891904   ;;  %vm3288_vm7 = vcmask 154624  }
 0x3de   : > { %1180 = vmatpush.msrb.mxu2 %v2830_v49  ;;  %1220 = vmatpush.msra.mxu0 %v2835_v17  ;;  %vm3285_vm4 = vmmov %vm3283_vm2 }
 0x3e0   : > { %1181 = vmatpush.msrb.mxu2 %v2840_v9  ;;  %1221 = vmatpush.msra.mxu0 %v2845_v62 }
 0x3e1   : > { %v2251_v36 = vpop.permute.xlu0 %2250 }
 0x3e2   : > { %v2253_v47 = vunpack.i.h.bf16 %v2251_v36  ;;  %v2252_v51 = vunpack.i.l.bf16 %v2251_v36  ;;  %v2226_v12 = vpop.permute.xlu1 %2225  ;;  %v2862_v36 = vsel %vm3288_vm7, %v2237_v0, %v2238_v18 }
 0x3e3   : > { %v2228_v63 = vunpack.i.h.bf16 %v2226_v12  ;;  %v2227_v61 = vunpack.i.l.bf16 %v2226_v12 }
 0x3e4   : > { %v2850_v20 = vsel %vm3283_vm2, %v2252_v51, %v2253_v47  ;;  %v2853_v53 = vsel %vm3285_vm4, %v2253_v47, %v1105_v19  ;;  %vm3289_vm2 = vmmov %vm3287_vm3 }
 0x3e5   : > { %3284 = vst [vmem:[#allocation15_spill] sm:$0xff] %v2850_v20  ;;  %v2856_v13 = vsel %vm3287_vm3, %v2227_v61, %v2228_v63  ;;  %1211 = vmatpush.msrb.mxu3 %v2850_v20  ;;  %1251 = vmatpush.msra.mxu1 %v2853_v53  ;;  %v3238_v61 = vunpack.i.l.bf16 %v2825_v1  ;;  %vm3290_vm4 = vmmov %vm3288_vm7  ;;  %vm3291_vm3 = vcmask 900096  }
 0x3e6   : > { %3286 = vst [vmem:[#allocation16_spill] sm:$0xff] %v2853_v53  ;;  %1182 = vmatpush.msrb.mxu2 %v2856_v13  ;;  %vm3293_vm7 = vmmov %vm3291_vm3 }
 0x3e7   : > { %v2879_v0 = vsel %vm3290_vm4, %v2238_v18, %v3238_v61  ;;  %v2208_v18 = vunpack.i.h.bf16 %v2795_v14  ;;  %vm3296_vm4 = vcmask 908288  }
 0x3e8   : > { %1183 = vmatpush.msrb.mxu2 %v2862_v36 }
 0x3e9   : > { %v1080_v20 = vpop.permute.xlu0 %1079 }
 0x3ea   : > { %v2865_v12 = vpop.permute.xlu1 %2240  ;;  %1184 = vmatpush.msrb.mxu2 %v2523_v30 }
 0x3eb   : > { %v2242_v48 = vunpack.i.l.bf16 %v2865_v12 }
 0x3ec   : > { %1185 = vmatpush.msrb.mxu2 %v2531_v32 }
 0x3ed   : > { %v2872_v47 = vsel %vm3289_vm2, %v2228_v63, %v2242_v48  ;;  %v2203_v63 = vunpack.i.h.bf16 %v2793_v2  ;;  %vm1173_vm2 = vcmask 130048   ;;  %v2233_v2 = vunpack.i.h.bf16 %v2808_v43 }
 0x3ee   : > { %1186 = vmatpush.msrb.mxu2 %v2539_v39  ;;  %1222 = vmatpush.msra.mxu0 %v2872_v47 }
 0x3f0   : > { %1187 = vmatpush.msrb.mxu2 %v2543_v40  ;;  %1223 = vmatpush.msra.mxu0 %v2879_v0 }
 0x3f2   : > { %v2256_v51 = vpop.permute.xlu1 %2255  ;;  %1188 = vmatpush.msrb.mxu2 %v2485_v8  ;;  %1224 = vmatpush.msra.mxu0 %v2526_v31 }
 0x3f3   : > { %v2258_v45 = vunpack.i.h.bf16 %v2256_v51  ;;  %v2257_v53 = vunpack.i.l.bf16 %v2256_v51  ;;  %v1118_v51 = vld [vmem:[%s3204_s5 + $0x8] sm:$0xff] }
 0x3f4   : > { %1189 = vmatpush.msrb.mxu2 %v2552_v54  ;;  %1225 = vmatpush.msra.mxu0 %v2556_v55 }
 0x3f5   : > { %v2890_v61 = vsel %vm3291_vm3, %v2257_v53, %v2258_v45  ;;  %v2893_v44 = vsel %vm3293_vm7, %v2258_v45, %v1080_v20  ;;  %v2905_v53 = vsel %vm3296_vm4, %v3295_v38, %v2203_v63  ;;  %v2223_v45 = vunpack.i.h.bf16 %v2810_v46 }
 0x3f6   : > { %3292 = vst [vmem:[#allocation17_spill] sm:$0xff] %v2890_v61  ;;  %1190 = vmatpush.msrb.mxu2 %v2564_v57  ;;  %1212 = vmatpush.msrb.mxu3 %v2890_v61  ;;  %v3297_v61 = vunpack.i.l.bf16 %v2795_v14  ;;  %vm3298_vm3 = vcmask 1039360   ;;  %vm3299_vm7 = vcmask 891904   ;;  %v2243_v14 = vunpack.i.h.bf16 %v2865_v12 }
 0x3f7   : > { %3294 = vst [vmem:[#allocation18_spill] sm:$0xff] %v2893_v44  ;;  %1226 = vmatpush.msra.mxu0 %v2568_v58  ;;  %1252 = vmatpush.msra.mxu1 %v2893_v44  ;;  %v1082_v44 = vpop.permute.xlu2 %1081  ;;  %vm3301_vm4 = vcmask 7168   ;;  %v2248_v12 = vunpack.i.h.bf16 %v2825_v1 }
 0x3f8   : > { %1257 = vmatpush.msra.mxu3 %v2905_v53  ;;  %1191 = vmatpush.msrb.mxu2 %v2576_v60  ;;  %v2914_v16 = vsel %vm3298_vm3, %v3297_v61, %v2208_v18  ;;  %v3300_v61 = vunpack.i.l.bf16 %v2810_v46  ;;  %vm3302_vm3 = vcmask 900096   ;;  %v3303_v46 = vunpack.i.l.bf16 %v2808_v43 }
 0x3f9   : > { %1227 = vmatpush.msra.mxu0 %v2580_v4  ;;  %2034 = vmatmul.msk.f32.vlgmr.msrb.gmra.mxu3 %vm1173_vm2, %v1118_v51 }
 0x3fa   : > { %1258 = vmatpush.msra.mxu3 %v2914_v16  ;;  %v1107_v38 = vpop.permute.xlu1 %1106  ;;  %1192 = vmatpush.msrb.mxu2 %v2586_v6  ;;  %v1004_v18 = vsel %vm3301_vm4, %v3300_v61, %v2223_v45  ;;  %vm3305_vm4 = vcmask 146432  }
 0x3fb   : > { %v2921_v63 = vsel %vm3299_vm7, %v1105_v19, %v1107_v38  ;;  %1228 = vmatpush.msra.mxu0 %v2487_v10  ;;  %v2934_v19 = vsel %vm3302_vm3, %v1080_v20, %v1082_v44  ;;  %vm3304_vm7 = vcmask 138240   ;;  %v954_v44 = vsel %vm3305_vm4, %v2242_v48, %v2243_v14  ;;  %2035 = vmatmul.msk.f32.vlgmr.msra.gmra.mxu1 %vm1173_vm2, %v1118_v51 }
 0x3fc   : > { %1725 = vmatpush.msra.mxu2 %v2799_v28  ;;  %1259 = vmatpush.msra.mxu3 %v2752_v50  ;;  %v1117_v28 = vld [vmem:[%s3204_s5] sm:$0xff]  ;;  %v979_v45 = vsel %vm3304_vm7, %v3303_v46, %v2233_v2  ;;  %vm3307_vm3 = vcmask 154624   ;;  %v3308_v20 = vmov 0.0  }
 0x3fd   : > { %1291 = vmatpush.msrb.mxu1 %v2921_v63  ;;  %1229 = vmatpush.msra.mxu0 %v2598_v21 }
 0x3fe   : > { %1726 = vmatpush.msra.mxu2 %v2814_v29  ;;  %1260 = vmatpush.msra.mxu3 %v1004_v18  ;;  %v3306_v29 = vunpack.i.l.bf16 %v2825_v1 }
 0x3ff   : > { %1292 = vmatpush.msrb.mxu1 %v2934_v19  ;;  %1230 = vmatpush.msra.mxu0 %v2606_v24 }
 0x400   : > { %1727 = vmatpush.msra.mxu2 %v2758_v3  ;;  %1261 = vmatpush.msra.mxu3 %v979_v45  ;;  %v929_v43 = vsel %vm3307_vm3, %v3306_v29, %v2248_v12  ;;  %vm3309_vm3 = vcmask 15360  }
 0x401   : > { %1193 = vmatmul.f32.vlgmr.msrb.gmra.mxu2 %v1117_v28  ;;  %1231 = vmatpush.msra.mxu0 %v2614_v26 }
 0x402   : > { %1728 = vmatpush.msra.mxu2 %v2830_v49  ;;  %1262 = vmatpush.msra.mxu3 %v954_v44 }
 0x403   : > { %1232 = vmatpush.msra.mxu0 %v2622_v34  ;;  %2036 = vmatmul.msk.f32.vlgmr.msrb.gmra.mxu1 %vm1173_vm2, %v1118_v51 }
 0x404   : > { %1729 = vmatpush.msra.mxu2 %v2840_v9  ;;  %1263 = vmatpush.msra.mxu3 %v929_v43 }
 0x405   : > { %1765 = vmatpush.msrb.mxu0 %v2804_v33 }
 0x406   : > { %1730 = vmatpush.msra.mxu2 %v2856_v13  ;;  %1233 = vmatmul.f32.vlgmr.msra.gmra.mxu0 %v1117_v28 }
 0x407   : > { %1264 = vmatpush.msra.mxu3 %v2519_v23  ;;  %1766 = vmatpush.msrb.mxu0 %v2819_v52 }
 0x408   : > { %1731 = vmatpush.msra.mxu2 %v2862_v36 }
 0x409   : > { %1265 = vmatpush.msra.mxu3 %v2559_v56  ;;  %1767 = vmatpush.msrb.mxu0 %v2762_v7 }
 0x40a   : > { %1732 = vmatpush.msra.mxu2 %v2523_v30 }
 0x40b   : > { %1266 = vmatpush.msra.mxu3 %v2571_v59  ;;  %1768 = vmatpush.msrb.mxu0 %v2835_v17 }
 0x40c   : > { %1733 = vmatpush.msra.mxu2 %v2531_v32 }
 0x40d   : > { %1267 = vmatpush.msra.mxu3 %v2583_v5  ;;  %1769 = vmatpush.msrb.mxu0 %v2845_v62 }
 0x40e   : > { %1734 = vmatpush.msra.mxu2 %v2539_v39 }
 0x40f   : > { %1268 = vmatpush.msra.mxu3 %v2499_v15  ;;  %1770 = vmatpush.msrb.mxu0 %v2872_v47 }
 0x410   : > { %1735 = vmatpush.msra.mxu2 %v2543_v40 }
 0x411   : > { %1269 = vmatpush.msra.mxu3 %v2601_v22  ;;  %1771 = vmatpush.msrb.mxu0 %v2879_v0 }
 0x412   : > { %1736 = vmatpush.msra.mxu2 %v2485_v8 }
 0x413   : > { %1270 = vmatpush.msra.mxu3 %v2609_v25  ;;  %1772 = vmatpush.msrb.mxu0 %v2526_v31 }
 0x414   : > { %1737 = vmatpush.msra.mxu2 %v2552_v54 }
 0x415   : > { %1271 = vmatpush.msra.mxu3 %v2617_v27  ;;  %1773 = vmatpush.msrb.mxu0 %v2556_v55 }
 0x416   : > { %1738 = vmatpush.msra.mxu2 %v2564_v57 }
 0x417   : > { %1272 = vmatpush.msra.mxu3 %v2625_v35  ;;  %1774 = vmatpush.msrb.mxu0 %v2568_v58 }
 0x418   : > { %1273 = vmatmul.f32.vlgmr.msra.gmra.mxu3 %v1117_v28  ;;  %1739 = vmatpush.msra.mxu2 %v2576_v60 }
 0x419   : > { %1805 = vmatpush.msrb.mxu3 %v2905_v53  ;;  %1775 = vmatpush.msrb.mxu0 %v2580_v4 }
 0x41a   : > { %1740 = vmatpush.msra.mxu2 %v2586_v6 }
 0x41b   : > { %1806 = vmatpush.msrb.mxu3 %v2914_v16  ;;  %1776 = vmatpush.msrb.mxu0 %v2487_v10 }
 0x41d   : > { %1807 = vmatpush.msrb.mxu3 %v2752_v50  ;;  %1777 = vmatpush.msrb.mxu0 %v2598_v21 }
 0x41f   : > { %1808 = vmatpush.msrb.mxu3 %v1004_v18  ;;  %1778 = vmatpush.msrb.mxu0 %v2606_v24 }
 0x421   : > { %1809 = vmatpush.msrb.mxu3 %v979_v45  ;;  %1779 = vmatpush.msrb.mxu0 %v2614_v26 }
 0x423   : > { %1810 = vmatpush.msrb.mxu3 %v954_v44  ;;  %1780 = vmatpush.msrb.mxu0 %v2622_v34 }
 0x425   : > { %1811 = vmatpush.msrb.mxu3 %v929_v43 }
 0x427   : > { %1812 = vmatpush.msrb.mxu3 %v2519_v23 }
 0x429   : > { %1813 = vmatpush.msrb.mxu3 %v2559_v56 }
 0x42b   : > { %1814 = vmatpush.msrb.mxu3 %v2571_v59 }
 0x42d   : > { %1815 = vmatpush.msrb.mxu3 %v2583_v5 }
 0x42f   : > { %1816 = vmatpush.msrb.mxu3 %v2499_v15 }
 0x431   : > { %1817 = vmatpush.msrb.mxu3 %v2601_v22 }
 0x433   : > { %1818 = vmatpush.msrb.mxu3 %v2609_v25 }
 0x435   : > { %1819 = vmatpush.msrb.mxu3 %v2617_v27 }
 0x437   : > { %1820 = vmatpush.msrb.mxu3 %v2625_v35 }
 0x478   : > { %v1254_v10 = vpop.f32.mrf.mxu1 }
 0x47c   : > { %v1214_v8 = vpop.f32.mrf.mxu3 }
 0x480   : > { %v1294_v54 = vpop.f32.mrf.mxu1 }
 0x483   : > { %v1234_v23 = vpop.f32.mrf.mxu0 }
 0x484   : > { %v1194_v30 = vpop.f32.mrf.mxu2  ;;  %v1255_v32 = vadd.f32 %v1254_v10, %v1234_v23 }
 0x485   : > { %v1215_v31 = vadd.f32 %v1214_v8, %v1194_v30 }
 0x486   : > { %v1298_v40 = vmul.f32 %v1255_v32, %v2636_v41 }
 0x487   : > { %v1297_v39 = vmul.f32 %v1215_v31, %v2634_v37 }
 0x488   : > { %v1306_v56 = vmul.f32 %v1298_v40, %v1255_v32 }
 0x489   : > { %v1305_v55 = vmul.f32 %v1297_v39, %v1215_v31  ;;  %v1300_v59 = vadd.f32 %v1298_v40, %v1297_v39 }
 0x48b   : > { %v1308_v5 = vadd.f32 %v1306_v56, %v1305_v55 }
 0x49b   : > { %v1274_v15 = vpop.f32.mrf.mxu3 }
 0x49c   : > { %v1295_v57 = vadd.f32 %v1294_v54, %v1274_v15 }
 0x49e   : > { %v1299_v58 = vmul.f32 %v1295_v57, %v2638_v42 }
 0x4a0   : > { %v1301_v60 = vadd.f32 %v1300_v59, %v1299_v58  ;;  %v1307_v4 = vmul.f32 %v1299_v58, %v1295_v57 }
 0x4a2   : > { %1302 = vadd.xlane.f32.xlu0 %v1301_v60  ;;  %v1309_v6 = vadd.f32 %v1308_v5, %v1307_v4 }
 0x4a4   : > { %1310 = vadd.xlane.f32.xlu1 %v1309_v6 }
 0x515   : > { %v1303_v21 = vpop.xlane.xlu0 %1302 }
 0x516   : > { %v1304_v22 = vmul.f32 0.00390625, %v1303_v21 }
 0x517   : > { %v1311_v24 = vpop.xlane.xlu1 %1310 }
 0x518   : > { %v1312_v25 = vmul.f32 0.00390625, %v1311_v24  ;;  %v1313_v26 = vmul.f32 %v1304_v22, %v1304_v22  ;;  %v1315_v7 = vsub.f32 %v1215_v31, %v1304_v22  ;;  %v1316_v52 = vsub.f32 %v1255_v32, %v1304_v22 }
 0x519   : > { %v1317_v1 = vsub.f32 %v1295_v57, %v1304_v22 }
 0x51a   : > { %v1314_v27 = vsub.f32 %v1312_v25, %v1313_v26 }
 0x51c   : > { %v1318_v34 = vadd.f32 1e-05, %v1314_v27 }
 0x51e   : > { %2382 = vrsqrt.f32 %v1318_v34  ;;  %vm1325_vm7 = vweird.f32 %v1318_v34 }
 0x524   : > { %v2383_v35 = vpop.eup %2382 }
 0x525   : > { %v1320_v16 = vmul.f32 %v2383_v35, %v1318_v34  ;;  %vm1326_vm2 = vweird.f32 %v2383_v35 }
 0x526   : > { %vm1327_vm4 = vmor %vm1325_vm7, %vm1326_vm2  ;;  %vm3310_vm2 = vcmask 1031168  }
 0x527   : > { %v1321_v62 = vmul.f32 %v2383_v35, %v1320_v16  ;;  %vm3312_vm7 = vmmov %vm3309_vm3 }
 0x529   : > { %v1322_v17 = vmul.f32 0.5, %v1321_v62 }
 0x52b   : > { %v1323_v50 = vsub.f32 1.5, %v1322_v17 }
 0x52d   : > { %v1324_v3 = vmul.f32 %v2383_v35, %v1323_v50 }
 0x52f   : > { %v1328_v49 = vsel %vm1327_vm4, %v2383_v35, %v1324_v3  ;;  %vm3313_vm4 = vmmov %vm3309_vm3 }
 0x530   : > { %v1329_v33 = vmul.f32 %v1328_v49, %v1315_v7  ;;  %v1330_v36 = vmul.f32 %v1328_v49, %v1316_v52  ;;  %v1331_v48 = vmul.f32 %v1328_v49, %v1317_v1 }
 0x532   : > { %v1332_v9 = vmax.f32 %v1329_v33, 0.0  ;;  %v1333_v47 = vmax.f32 %v1330_v36, 0.0  ;;  %v1334_v0 = vmax.f32 %v1331_v48, 0.0 }
 0x534   : > { %v2259_v13 = vpack.i.bf16 %v1332_v9, %v3308_v20  ;;  %v2264_v51 = vpack.i.bf16 %v1334_v0, %v1333_v47  ;;  %v2269_v53 = vpack.i.bf16 %v1333_v47, %v1332_v9  ;;  %v2274_v38 = vpack.i.bf16 0.0, %v1334_v0 }
 0x536   : > { %2260 = vrot.lane.b32.xlu2 %v2259_v13, %s2404_s12 }
 0x53e   : > { %2265 = vrot.lane.b32.xlu2 %v2264_v51, %s2404_s12 }
 0x546   : > { %2270 = vrot.lane.b32.xlu2 %v2269_v53, %s2405_s14 }
 0x54e   : > { %2275 = vrot.lane.b32.xlu2 %v2274_v38, %s2405_s14 }
 0x590   : > { %v2261_v2 = vpop.permute.xlu2 %2260 }
 0x591   : > { %v2263_v61 = vunpack.i.h.bf16 %v2261_v2  ;;  %v2262_v18 = vunpack.i.l.bf16 %v2261_v2 }
 0x593   : > { %v1355_v28 = vsel %vm3309_vm3, %v2262_v18, %v2263_v61  ;;  %vm3314_vm3 = vmmov %vm3310_vm2 }
 0x594   : > { %v1361_v29 = vsel %vm2657_vm10, %v1355_v28, %v1332_v9  ;;  %vm3319_vm10 = vcmask 293888  }
 0x598   : > { %v2266_v14 = vpop.permute.xlu2 %2265 }
 0x599   : > { %v2268_v43 = vunpack.i.h.bf16 %v2266_v14  ;;  %v2267_v8 = vunpack.i.l.bf16 %v2266_v14 }
 0x59b   : > { %v1356_v31 = vsel %vm3312_vm7, %v2263_v61, %v2267_v8  ;;  %v1357_v32 = vsel %vm3313_vm4, %v2267_v8, %v2268_v43  ;;  %vm3338_vm4 = vcmask 138240   ;;  %v3343_v61 = vld [vmem:[#allocation15_spill] sm:$0xff] }
 0x59c   : > { %v1363_v56 = vsel %vm2677_vm12, %v1357_v32, %v1334_v0  ;;  %v1362_v58 = vsel %vm2681_vm13, %v1356_v31, %v1333_v47  ;;  %vm3322_vm12 = vmmov %vm3319_vm10 }
 0x59d   : > { %vm3326_vm13 = vmmov %vm3319_vm10 }
 0x5a0   : > { %v2271_v12 = vpop.permute.xlu2 %2270 }
 0x5a1   : > { %v2273_v46 = vunpack.i.h.bf16 %v2271_v12  ;;  %v2272_v45 = vunpack.i.l.bf16 %v2271_v12 }
 0x5a3   : > { %v1373_v44 = vsel %vm3310_vm2, %v2272_v45, %v2273_v46 }
 0x5a4   : > { %v1379_v30 = vsel %vm2661_vm11, %v1373_v44, %v1361_v29 }
 0x5a5   : > { %v2279_v23 = vpack.i.bf16 %v1379_v30, %v3308_v20 }
 0x5a7   : > { %2280 = vrot.lane.b32.xlu2 %v2279_v23, %s2406_s27 }
 0x5a8   : > { %v2276_v39 = vpop.permute.xlu2 %2275 }
 0x5a9   : > { %v2278_v40 = vunpack.i.h.bf16 %v2276_v39  ;;  %v2277_v54 = vunpack.i.l.bf16 %v2276_v39 }
 0x5ab   : > { %v1374_v15 = vsel %vm3314_vm3, %v2273_v46, %v2277_v54  ;;  %v1375_v11 = vsel %vm3310_vm2, %v2277_v54, %v2278_v40  ;;  %vm3340_vm2 = vcmask 146432  }
 0x5ac   : > { %v1381_v60 = vsel %vm2685_vm14, %v1375_v11, %v1363_v56  ;;  %v1380_v5 = vsel %vm2689_vm0, %v1374_v15, %v1362_v58  ;;  %vm3320_vm0 = vcmask 752640   ;;  %v1638_v15 = vld [vmem:[%s3205_s6] sm:$0xff] }
 0x5ad   : > { %v2294_v6 = vpack.i.bf16 0.0, %v1381_v60  ;;  %v2284_v21 = vpack.i.bf16 %v1381_v60, %v1380_v5  ;;  %v2289_v22 = vpack.i.bf16 %v1380_v5, %v1379_v30  ;;  %vm3321_vm11 = vmmov %vm3320_vm0  ;;  %1741 = vmatmul.f32.vlgmr.msra.gmra.mxu2 %v1638_v15  ;;  %1821 = vmatmul.f32.vlgmr.msrb.gmra.mxu3 %v1638_v15 }
 0x5ae   : > { %vm3328_vm14 = vmmov %vm3320_vm0  ;;  %1781 = vmatmul.f32.vlgmr.msrb.gmra.mxu0 %v1638_v15 }
 0x5af   : > { %2295 = vrot.lane.b32.xlu1 %v2294_v6, %s2407_s28  ;;  %2285 = vrot.lane.b32.xlu0 %v2284_v21, %s2406_s27  ;;  %s332_s27 = scalar_lea.vmem %s3208_s9, %s2045_s13 }
 0x5b0   : > { %2290 = vrot.lane.b32.xlu2 %v2289_v22, %s2407_s28 }
 0x601   : > { %v2281_v24 = vpop.permute.xlu2 %2280 }
 0x602   : > { %v2283_v26 = vunpack.i.h.bf16 %v2281_v24  ;;  %v2282_v27 = vunpack.i.l.bf16 %v2281_v24 }
 0x604   : > { %v1402_v17 = vsel %vm3319_vm10, %v2282_v27, %v2283_v26 }
 0x605   : > { %v1408_v9 = vsel %vm2719_vm9, %v1402_v17, %v1379_v30  ;;  %vm3335_vm9 = vcmask 1039360  }
 0x606   : > { %vm3341_vm10 = vmmov %vm3335_vm9 }
 0x60a   : > { %v2291_v25 = vpop.permute.xlu2 %2290 }
 0x60b   : > { %v2293_v34 = vunpack.i.h.bf16 %v2291_v25  ;;  %v2292_v35 = vunpack.i.l.bf16 %v2291_v25 }
 0x60d   : > { %v1420_v49 = vsel %vm3320_vm0, %v2292_v35, %v2293_v34  ;;  %vm3342_vm0 = vcmask 154624  }
 0x60e   : > { %v1426_v0 = vsel %vm2734_vm6, %v1420_v49, %v1408_v9 }
 0x60f   : > { %v2334_v46 = vpack.i.bf16 %v1426_v0, %v3308_v20 }
 0x621   : > { %v2296_v16 = vpop.permute.xlu1 %2295  ;;  %v2286_v62 = vpop.permute.xlu0 %2285 }
 0x622   : > { %v2297_v50 = vunpack.i.l.bf16 %v2296_v16  ;;  %v2288_v3 = vunpack.i.h.bf16 %v2286_v62  ;;  %v2287_v7 = vunpack.i.l.bf16 %v2286_v62  ;;  %v2298_v13 = vunpack.i.h.bf16 %v2296_v16 }
 0x624   : > { %v1421_v33 = vsel %vm3321_vm11, %v2293_v34, %v2297_v50  ;;  %v1403_v52 = vsel %vm3322_vm12, %v2283_v26, %v2287_v7  ;;  %v1404_v51 = vsel %vm3326_vm13, %v2287_v7, %v2288_v3  ;;  %v1422_v14 = vsel %vm3328_vm14, %v2297_v50, %v2298_v13 }
 0x625   : > { %v1409_v48 = vsel %vm2724_vm15, %v1403_v52, %v1380_v5  ;;  %v1410_v18 = vsel %vm2715_vm8, %v1404_v51, %v1381_v60  ;;  %vm3334_vm8 = vcmask 908288   ;;  %vm3336_vm15 = vcmask 7168  }
 0x626   : > { %v3048_v38 = vsel %vm2738_vm5, %v1421_v33, %v1409_v48  ;;  %v3059_v12 = vsel %vm2730_vm1, %v1422_v14, %v1410_v18  ;;  %vm3331_vm1 = vcmask 891904   ;;  %vm3332_vm5 = vcmask 900096   ;;  %vm3339_vm3 = vmmov %vm3334_vm8 }
 0x627   : > { %v2319_v2 = vpack.i.bf16 %v3048_v38, %v1426_v0  ;;  %v2324_v45 = vpack.i.bf16 0.0, %v3059_v12  ;;  %v2364_v44 = vpack.i.bf16 %v3059_v12, %v3048_v38  ;;  %vm3333_vm6 = vmmov %vm3331_vm1  ;;  %vm1721_vm11 = vcmask 719872  }
 0x628   : > { %vm3337_vm7 = vmmov %vm3332_vm5 }
 0x629   : > { %2320 = vrot.lane.b32.xlu1 %v2319_v2, %s2395_s19  ;;  %2310 = vrot.lane.b32.xlu0 %v2319_v2, %s2400_s23  ;;  %vm3345_vm12 = vmmov %vm3331_vm1 }
 0x62a   : > { %2300 = vrot.lane.b32.xlu2 %v2319_v2, %s2397_s21  ;;  %vm3346_vm13 = vmmov %vm3336_vm15 }
 0x62b   : > { %vm3347_vm14 = vmmov %vm3332_vm5 }
 0x631   : > { %2335 = vrot.lane.b32.xlu1 %v2334_v46, %s2402_s25  ;;  %2325 = vrot.lane.b32.xlu0 %v2324_v45, %s2396_s20 }
 0x632   : > { %2305 = vrot.lane.b32.xlu2 %v2319_v2, %s2396_s20 }
 0x639   : > { %2350 = vrot.lane.b32.xlu1 %v2334_v46, %s2399_s22  ;;  %2340 = vrot.lane.b32.xlu0 %v2324_v45, %s2395_s19 }
 0x63a   : > { %2315 = vrot.lane.b32.xlu2 %v2324_v45, %s2397_s21 }
 0x641   : > { %2365 = vrot.lane.b32.xlu1 %v2364_v44, %s2401_s24  ;;  %2355 = vrot.lane.b32.xlu0 %v2364_v44, %s2402_s25 }
 0x642   : > { %2330 = vrot.lane.b32.xlu2 %v2324_v45, %s2400_s23 }
 0x649   : > { %2370 = vrot.lane.b32.xlu0 %v2364_v44, %s2399_s22 }
 0x64a   : > { %2345 = vrot.lane.b32.xlu2 %v2334_v46, %s2401_s24 }
 0x652   : > { %2360 = vrot.lane.b32.xlu2 %v2334_v46, %s2403_s26 }
 0x65a   : > { %2375 = vrot.lane.b32.xlu2 %v2364_v44, %s2403_s26  ;;  %v1639_v44 = vld [vmem:[%s3205_s6 + $0x8] sm:$0xff] }
 0x684   : > { %v3078_v20 = vpop.permute.xlu2 %2300 }
 0x685   : > { %v2303_v29 = vunpack.i.h.bf16 %v3078_v20  ;;  %v2302_v43 = vunpack.i.l.bf16 %v3078_v20 }
 0x687   : > { %v1629_v8 = vsel %vm3331_vm1, %v2302_v43, %v2303_v29  ;;  %v3344_v43 = vld [vmem:[#allocation17_spill] sm:$0xff]  ;;  %vm3348_vm1 = vmmov %vm3338_vm4 }
 0x688   : > { %1750 = vmatpush.msra.mxu1 %v1629_v8 }
 0x68c   : > { %v3085_v10 = vpop.permute.xlu2 %2305 }
 0x68d   : > { %v2308_v30 = vunpack.i.h.bf16 %v3085_v10  ;;  %v2307_v23 = vunpack.i.l.bf16 %v3085_v10 }
 0x68f   : > { %v1604_v31 = vsel %vm3332_vm5, %v2307_v23, %v2308_v30  ;;  %vm3349_vm5 = vmmov %vm3339_vm3 }
 0x690   : > { %1751 = vmatpush.msra.mxu1 %v1604_v31 }
 0x694   : > { %v3092_v32 = vpop.permute.xlu2 %2315 }
 0x695   : > { %v2318_v39 = vunpack.i.h.bf16 %v3092_v32  ;;  %v2317_v40 = vunpack.i.l.bf16 %v3092_v32 }
 0x697   : > { %v1631_v54 = vsel %vm3333_vm6, %v2317_v40, %v2318_v39  ;;  %vm3350_vm6 = vmmov %vm3335_vm9 }
 0x698   : > { %1830 = vmatpush.msrb.mxu2 %v1631_v54 }
 0x69b   : > { %v3102_v11 = vpop.permute.xlu1 %2320  ;;  %v3104_v55 = vpop.permute.xlu0 %2310 }
 0x69c   : > { %v2323_v56 = vunpack.i.h.bf16 %v3102_v11  ;;  %v2322_v57 = vunpack.i.l.bf16 %v3102_v11  ;;  %v2313_v58 = vunpack.i.h.bf16 %v3104_v55  ;;  %v2312_v59 = vunpack.i.l.bf16 %v3104_v55  ;;  %v3110_v60 = vpop.permute.xlu2 %2330 }
 0x69d   : > { %v2333_v6 = vunpack.i.h.bf16 %v3110_v60  ;;  %v2332_v21 = vunpack.i.l.bf16 %v3110_v60 }
 0x69e   : > { %v1579_v4 = vsel %vm3334_vm8, %v2312_v59, %v2313_v58  ;;  %v1554_v5 = vsel %vm3335_vm9, %v2322_v57, %v2323_v56  ;;  %vm3351_vm8 = vmmov %vm3340_vm2  ;;  %v3358_v59 = vld [vmem:[#allocation18_spill] sm:$0xff] }
 0x69f   : > { %1752 = vmatpush.msra.mxu1 %v1579_v4  ;;  %v1581_v7 = vsel %vm3339_vm3, %v2332_v21, %v2333_v6  ;;  %v1580_v20 = vsel %vm3349_vm5, %v2313_v58, %v2332_v21  ;;  %vm3352_vm9 = vmmov %vm3346_vm13  ;;  %v3357_v58 = vld [vmem:[#allocation16_spill] sm:$0xff]  ;;  %v1742_v4 = vpop.f32.mrf.mxu2  ;;  %v1822_v6 = vpop.f32.mrf.mxu3 }
 0x6a0   : > { %vm3356_vm3 = vmmov %vm3342_vm0 }
 0x6a1   : > { %1753 = vmatpush.msra.mxu1 %v1554_v5 }
 0x6a3   : > { %v3120_v22 = vpop.permute.xlu1 %2335  ;;  %v2326_v24 = vpop.permute.xlu0 %2325  ;;  %1754 = vmatpush.msra.mxu1 %v1426_v0 }
 0x6a4   : > { %v2338_v25 = vunpack.i.h.bf16 %v3120_v22  ;;  %v2337_v26 = vunpack.i.l.bf16 %v3120_v22  ;;  %v2328_v27 = vunpack.i.h.bf16 %v2326_v24  ;;  %v2327_v34 = vunpack.i.l.bf16 %v2326_v24  ;;  %v3124_v35 = vpop.permute.xlu2 %2345 }
 0x6a5   : > { %v2348_v16 = vunpack.i.h.bf16 %v3124_v35  ;;  %v2347_v62 = vunpack.i.l.bf16 %v3124_v35 }
 0x6a6   : > { %v1523_v17 = vsel %vm3336_vm15, %v2337_v26, %v2338_v25  ;;  %v1606_v50 = vsel %vm3337_vm7, %v2327_v34, %v2328_v27  ;;  %v1605_v23 = vsel %vm3347_vm14, %v2308_v30, %v2327_v34  ;;  %vm3353_vm15 = vmmov %vm3342_vm0 }
 0x6a7   : > { %1755 = vmatpush.msra.mxu1 %v1523_v17  ;;  %1831 = vmatpush.msrb.mxu2 %v1606_v50  ;;  %v1498_v3 = vsel %vm3338_vm4, %v2347_v62, %v2348_v16  ;;  %vm3354_vm7 = vmmov %vm3348_vm1 }
 0x6a8   : > { %vm3355_vm4 = vmmov %vm3340_vm2 }
 0x6a9   : > { %1756 = vmatpush.msra.mxu1 %v1498_v3  ;;  %1832 = vmatpush.msrb.mxu2 %v1581_v7 }
 0x6ab   : > { %v2351_v49 = vpop.permute.xlu1 %2350  ;;  %v2341_v33 = vpop.permute.xlu0 %2340 }
 0x6ac   : > { %v2353_v52 = vunpack.i.h.bf16 %v2351_v49  ;;  %v2352_v1 = vunpack.i.l.bf16 %v2351_v49  ;;  %v2343_v9 = vunpack.i.h.bf16 %v2341_v33  ;;  %v2342_v13 = vunpack.i.l.bf16 %v2341_v33  ;;  %v2361_v36 = vpop.permute.xlu2 %2360 }
 0x6ad   : > { %v2363_v48 = vunpack.i.h.bf16 %v2361_v36  ;;  %v2362_v47 = vunpack.i.l.bf16 %v2361_v36 }
 0x6ae   : > { %v1473_v0 = vsel %vm3340_vm2, %v2352_v1, %v2353_v52  ;;  %v1556_v51 = vsel %vm3341_vm10, %v2342_v13, %v2343_v9  ;;  %v1555_v32 = vsel %vm3350_vm6, %v2323_v56, %v2342_v13 }
 0x6af   : > { %1757 = vmatpush.msra.mxu1 %v1473_v0  ;;  %1833 = vmatpush.msrb.mxu2 %v1556_v51  ;;  %v1448_v53 = vsel %vm3342_vm0, %v2362_v47, %v2363_v48 }
 0x6b1   : > { %1758 = vmatpush.msra.mxu1 %v1448_v53  ;;  %1834 = vmatpush.msrb.mxu2 %v3059_v12  ;;  %v1630_v12 = vsel %vm3345_vm12, %v2303_v29, %v2317_v40 }
 0x6b3   : > { %v2366_v2 = vpop.permute.xlu1 %2365  ;;  %v2356_v14 = vpop.permute.xlu0 %2355  ;;  %1759 = vmatpush.msra.mxu1 %v3343_v61 }
 0x6b4   : > { %v2368_v18 = vunpack.i.h.bf16 %v2366_v2  ;;  %v2367_v28 = vunpack.i.l.bf16 %v2366_v2  ;;  %v2358_v46 = vunpack.i.h.bf16 %v2356_v14  ;;  %v2357_v45 = vunpack.i.l.bf16 %v2356_v14  ;;  %v2376_v39 = vpop.permute.xlu2 %2375 }
 0x6b5   : > { %1760 = vmatpush.msra.mxu1 %v3344_v43  ;;  %v2378_v10 = vunpack.i.h.bf16 %v2376_v39  ;;  %v2377_v40 = vunpack.i.l.bf16 %v2376_v39  ;;  %v1886_v43 = vld [vmem:[%s3206_s7] sm:$0xff] }
 0x6b6   : > { %v1525_v8 = vsel %vm3346_vm13, %v2357_v45, %v2358_v46  ;;  %2037 = vmatmul.msk.f32.vlgmr.msra.gmra.mxu1 %vm1721_vm11, %v1639_v44  ;;  %v1500_v31 = vsel %vm3348_vm1, %v2367_v28, %v2368_v18  ;;  %v1524_v55 = vsel %vm3352_vm9, %v2338_v25, %v2357_v45  ;;  %v1499_v11 = vsel %vm3354_vm7, %v2348_v16, %v2367_v28 }
 0x6b7   : > { %1790 = vmatpush.msrb.mxu1 %v1630_v12  ;;  %1835 = vmatpush.msrb.mxu2 %v1525_v8  ;;  %v1450_v57 = vsel %vm3353_vm15, %v2377_v40, %v2378_v10  ;;  %v1449_v56 = vsel %vm3356_vm3, %v2363_v48, %v2377_v40 }
 0x6b9   : > { %1791 = vmatpush.msrb.mxu1 %v1605_v23  ;;  %1836 = vmatpush.msrb.mxu2 %v1500_v31 }
 0x6bb   : > { %1792 = vmatpush.msrb.mxu1 %v1580_v20  ;;  %v2371_v29 = vpop.permute.xlu0 %2370 }
 0x6bc   : > { %v2373_v30 = vunpack.i.h.bf16 %v2371_v29  ;;  %v2372_v54 = vunpack.i.l.bf16 %v2371_v29 }
 0x6bd   : > { %1793 = vmatpush.msrb.mxu1 %v1555_v32 }
 0x6be   : > { %v1475_v15 = vsel %vm3351_vm8, %v2372_v54, %v2373_v30 }
 0x6bf   : > { %1794 = vmatpush.msrb.mxu1 %v3048_v38  ;;  %1837 = vmatpush.msrb.mxu2 %v1475_v15  ;;  %v1474_v38 = vsel %vm3355_vm4, %v2353_v52, %v2372_v54 }
 0x6c1   : > { %1795 = vmatpush.msrb.mxu1 %v1524_v55  ;;  %1838 = vmatpush.msrb.mxu2 %v1450_v57 }
 0x6c3   : > { %1796 = vmatpush.msrb.mxu1 %v1499_v11  ;;  %1839 = vmatpush.msrb.mxu2 %v2921_v63  ;;  %v1782_v63 = vpop.f32.mrf.mxu0 }
 0x6c5   : > { %1797 = vmatpush.msrb.mxu1 %v1474_v38  ;;  %1840 = vmatpush.msrb.mxu2 %v2934_v19 }
 0x6c6   : > { %2039 = vmatmul.msk.f32.vlgmr.msrb.gmra.mxu2 %vm1721_vm11, %v1639_v44 }
 0x6c7   : > { %1798 = vmatpush.msrb.mxu1 %v1449_v56 }
 0x6c9   : > { %1799 = vmatpush.msrb.mxu1 %v3357_v58 }
 0x6cb   : > { %1800 = vmatpush.msrb.mxu1 %v3358_v59 }
 0x6cc   : > { %2038 = vmatmul.msk.f32.vlgmr.msrb.gmra.mxu1 %vm1721_vm11, %v1639_v44  ;;  %vm3359_vm11 = vcmask 64512  }
 0x6cd   : > { %vm3360_vm12 = vmmov %vm3359_vm11 }
 0x6ce   : > { %vm3361_vm13 = vmmov %vm3359_vm11 }
 0x733   : > { %v1762_v60 = vpop.f32.mrf.mxu1 }
 0x734   : > { %v1763_v5 = vadd.f32 %v1762_v60, %v1742_v4 }
 0x736   : > { %v1845_v22 = vmul.f32 %v1763_v5, %v2634_v37 }
 0x738   : > { %v1853_v34 = vmul.f32 %v1845_v22, %v1763_v5 }
 0x749   : > { %v1802_v21 = vpop.f32.mrf.mxu1  ;;  %v1842_v24 = vpop.f32.mrf.mxu2 }
 0x74a   : > { %v1803_v19 = vadd.f32 %v1802_v21, %v1782_v63  ;;  %v1843_v25 = vadd.f32 %v1842_v24, %v1822_v6 }
 0x74c   : > { %v1846_v26 = vmul.f32 %v1803_v19, %v2636_v41  ;;  %v1847_v27 = vmul.f32 %v1843_v25, %v2638_v42  ;;  %v1890_v41 = vld [vmem:[%s3207_s8] sm:$0xff] }
 0x74d   : > { %1893 = vperm.xlu2 %2379, %v1890_v41  }
 0x74e   : > { %v1854_v35 = vmul.f32 %v1846_v26, %v1803_v19  ;;  %v1848_v16 = vadd.f32 %v1846_v26, %v1845_v22  ;;  %v1855_v62 = vmul.f32 %v1847_v27, %v1843_v25 }
 0x750   : > { %v1849_v17 = vadd.f32 %v1848_v16, %v1847_v27  ;;  %v1856_v50 = vadd.f32 %v1854_v35, %v1853_v34 }
 0x752   : > { %1850 = vadd.xlane.f32.xlu1 %v1849_v17  ;;  %v1857_v3 = vadd.f32 %v1856_v50, %v1855_v62 }
 0x754   : > { %1858 = vadd.xlane.f32.xlu0 %v1857_v3 }
 0x7a7   : > { %v1894_v12 = vpop.permute.xlu2 %1893 }
 0x7c5   : > { %v1851_v7 = vpop.xlane.xlu1 %1850 }
 0x7c6   : > { %v1852_v49 = vmul.f32 0.00390625, %v1851_v7 }
 0x7c7   : > { %v1859_v33 = vpop.xlane.xlu0 %1858 }
 0x7c8   : > { %v1860_v37 = vmul.f32 0.00390625, %v1859_v33  ;;  %v1861_v52 = vmul.f32 %v1852_v49, %v1852_v49  ;;  %v1863_v51 = vsub.f32 %v1763_v5, %v1852_v49  ;;  %v1864_v53 = vsub.f32 %v1803_v19, %v1852_v49 }
 0x7c9   : > { %v1865_v2 = vsub.f32 %v1843_v25, %v1852_v49 }
 0x7ca   : > { %v1862_v1 = vsub.f32 %v1860_v37, %v1861_v52 }
 0x7cc   : > { %v1866_v9 = vadd.f32 1e-05, %v1862_v1 }
 0x7ce   : > { %2384 = vrsqrt.f32 %v1866_v9  ;;  %vm1873_vm10 = vweird.f32 %v1866_v9 }
 0x7d4   : > { %v2385_v42 = vpop.eup %2384 }
 0x7d5   : > { %v1868_v13 = vmul.f32 %v2385_v42, %v1866_v9  ;;  %vm1874_vm2 = vweird.f32 %v2385_v42 }
 0x7d6   : > { %vm1875_vm0 = vmor %vm1873_vm10, %vm1874_vm2 }
 0x7d7   : > { %v1869_v36 = vmul.f32 %v2385_v42, %v1868_v13 }
 0x7d9   : > { %v1870_v48 = vmul.f32 0.5, %v1869_v36 }
 0x7db   : > { %v1871_v47 = vsub.f32 1.5, %v1870_v48 }
 0x7dd   : > { %v1872_v0 = vmul.f32 %v2385_v42, %v1871_v47 }
 0x7df   : > { %v1876_v14 = vsel %vm1875_vm0, %v2385_v42, %v1872_v0 }
 0x7e0   : > { %v1877_v61 = vmul.f32 %v1876_v14, %v1863_v51  ;;  %v1878_v18 = vmul.f32 %v1876_v14, %v1864_v53  ;;  %v1879_v28 = vmul.f32 %v1876_v14, %v1865_v2 }
 0x7e2   : > { %v1880_v46 = vmax.f32 %v1877_v61, 0.0  ;;  %v1881_v45 = vmax.f32 %v1878_v18, 0.0  ;;  %v1882_v44 = vmax.f32 %v1879_v28, 0.0 }
 0x7e4   : > { %1914 = vmatpush.msra.mxu1 %v1880_v46  ;;  %1934 = vmatpush.msra.mxu0 %v1881_v45 }
 0x7e5   : > { %2041 = vmatmul.msk.f32.vlgmr.msra.gmra.mxu0 %vm3359_vm11, %v1886_v43  ;;  %2040 = vmatmul.msk.f32.vlgmr.msra.gmra.mxu1 %vm3360_vm12, %v1886_v43 }
 0x7e6   : > { %1954 = vmatpush.msrb.mxu1 %v1882_v44 }
 0x7ed   : > { %2042 = vmatmul.msk.f32.vlgmr.msrb.gmra.mxu1 %vm3361_vm13, %v1886_v43 }
 0x862   : > { %v1936_v8 = vpop.f32.mrf.mxu0  ;;  %v1916_v23 = vpop.f32.mrf.mxu1 }
 0x863   : > { %v1937_v31 = vadd.f32 %v1936_v8, %v1894_v12  ;;  %v1917_v39 = vadd.f32 %v1916_v23, %v1894_v12 }
 0x865   : > { %1960 = vst [vmem:[%s332_s27 + $0x8] sm:$0xff] %v1937_v31 }
 0x866   : > { %1959 = vst [vmem:[%s332_s27] sm:$0xff] %v1917_v39 }
 0x86a   : > { %v1956_v20 = vpop.f32.mrf.mxu1 }
 0x86b   : > { %v1957_v29 = vadd.f32 %v1956_v20, %v1894_v12 }
 0x86d   : > { %1961 = vst [vmem:[%s332_s27 + $0x10] sm:$0xff] %v1957_v29 }
 0x86e PF: > { %s19_s30 = sadd.s32 1, %s2392_s30  }
 0x86f   : > { %p16_p4 = scmp.ge.s32.totalorder %s19_s30, 4  }
 0x871   :  { %18 = sbr.rel (!%p16_p4) target bundleno = 1 (0x1), region = 90 }

</bundles_post_ra>
